<compile_context>
chip_gen: v7x
topology: tpu7x:2x2x1
jax: 0.10.0
libtpu: 0.0.40
codegen_flags: <defaults>
</compile_context>

<pallas_src>
import functools

import jax
import jax.numpy as jnp
from jax import lax
from jax.experimental import pallas as pl
from jax.experimental.pallas import tpu as pltpu


# ---------------------------------------------------------------------------
# VMEM budgets (generation-aware, conservative)
# ---------------------------------------------------------------------------
def _vmem_limit_bytes():
    cap = 64 * 1024 * 1024            # conservative default (v7x physical VMEM)
    try:
        cap = int(pltpu.get_tpu_info().vmem_capacity_bytes)
    except Exception:
        pass
    # Leave headroom; v5e/v6e (128 MiB) -> 64 MiB, v7x (64 MiB) -> 48 MiB.
    return max(16 * 1024 * 1024, min((3 * cap) // 4, 64 * 1024 * 1024))


_VMEM_LIMIT = _vmem_limit_bytes()
_FUSED_BN_BUDGET = _VMEM_LIMIT // 2   # single-block fused GEMM+BN+act path
_TILE_BUDGET = _VMEM_LIMIT // 4       # per-block byte target for tiled paths


def _compiler_params(sem):
    return pltpu.CompilerParams(dimension_semantics=sem,
                                vmem_limit_bytes=_VMEM_LIMIT)


# ---------------------------------------------------------------------------
# Pallas kernels
# ---------------------------------------------------------------------------
def _apply_act(y, act):
    if act == "leaky":
        return jnp.where(y >= 0, y, 0.2 * y)
    if act == "sigmoid":
        return jax.nn.sigmoid(y)
    return y


def _gemm_act_kernel(w_ref, p_ref, out_ref, *, act):
    """out = act(w @ p).  w:(Cout,K) bf16, p:(K,tm) bf16, out:(Cout,tm) bf16."""
    y = jnp.dot(w_ref[...], p_ref[...], preferred_element_type=jnp.float32)
    out_ref[...] = _apply_act(y, act).astype(out_ref.dtype)


def _gemm_bn_act_kernel(w_ref, p_ref, out_ref, *, act):
    """Fully fused: y = w @ p; train-mode BatchNorm over M; activation.

    Single grid step -- the whole (Cout, M) activation stays in VMEM/vregs, so
    there is no HBM round trip for statistics / normalization.
    """
    y = jnp.dot(w_ref[...], p_ref[...], preferred_element_type=jnp.float32)
    m = y.shape[1]
    mean = jnp.sum(y, axis=1, keepdims=True) / m
    var = jnp.maximum(jnp.sum(y * y, axis=1, keepdims=True) / m - mean * mean, 0.0)
    scale = lax.rsqrt(var + 1e-5)
    out_ref[...] = _apply_act((y - mean) * scale, act).astype(out_ref.dtype)


def _gemm_bn_act_twopass_kernel(w_ref, p_ref, out_ref, sum_ref, sumsq_ref, *,
                                act, m_total):
    """Large-M fallback in ONE call: pass 0 accumulates per-channel sums, pass 1
    recomputes each tile (matmul is cheap here) and writes the normalized
    activation -- no HBM materialization of the pre-BN activation."""
    phase = pl.program_id(0)
    y = jnp.dot(w_ref[...], p_ref[...], preferred_element_type=jnp.float32)

    @pl.when(jnp.logical_and(phase == 0, pl.program_id(1) == 0))
    def _():
        sum_ref[...] = jnp.zeros_like(sum_ref)
        sumsq_ref[...] = jnp.zeros_like(sumsq_ref)

    @pl.when(phase == 0)
    def _():
        sum_ref[...] += jnp.sum(y, axis=1, keepdims=True)
        sumsq_ref[...] += jnp.sum(y * y, axis=1, keepdims=True)

    @pl.when(phase == 1)
    def _():
        mean = sum_ref[...] / m_total
        var = jnp.maximum(sumsq_ref[...] / m_total - mean * mean, 0.0)
        scale = lax.rsqrt(var + 1e-5)
        out_ref[...] = _apply_act((y - mean) * scale, act).astype(out_ref.dtype)


def _final_block_kernel(w4_ref, p4_ref, w5t_ref, sel_ref, out_ref):
    """Fused layers 4+5: conv4-GEMM + BatchNorm + LeakyReLU + final 4x4 valid
    conv (== per-sample full contraction) + sigmoid, all VMEM-resident."""
    # ---- layer 4 -----------------------------------------------------------
    y = jnp.dot(w4_ref[...], p4_ref[...], preferred_element_type=jnp.float32)
    m = y.shape[1]
    mean = jnp.sum(y, axis=1, keepdims=True) / m
    var = jnp.maximum(jnp.sum(y * y, axis=1, keepdims=True) / m - mean * mean, 0.0)
    a4 = _apply_act((y - mean) * lax.rsqrt(var + 1e-5), "leaky")   # (C4, N*pix) f32
    # ---- layer 5 -----------------------------------------------------------
    # w5t is w5 flattened to (C4, pix) and tiled along M; sel[(n, n*pix)] picks
    # the lanes belonging to sample n, so no in-kernel reshape/transpose.
    z = jnp.sum(a4 * w5t_ref[...], axis=0, keepdims=True)          # (1, N*pix)
    logits = jnp.sum(sel_ref[...] * z, axis=1, keepdims=True)      # (N, 1)
    out_ref[...] = jax.nn.sigmoid(logits)


# ---------------------------------------------------------------------------
# pallas_call wrappers
# ---------------------------------------------------------------------------
def _pick_tm(m, per_col_bytes, fixed_bytes, budget_bytes, min_tiles=1):
    """Largest M tile (multiple of 128 dividing m) within the VMEM budget."""
    if m < 128 or m % 128 != 0:
        return m                              # full extent is always legal
    avail = max(budget_bytes - fixed_bytes, 128 * per_col_bytes)
    tm = min(m, max(128, (avail // max(per_col_bytes, 1)) // 128 * 128))
    if min_tiles > 1:                         # >=2 parallel steps (v7x megacore)
        tm = min(tm, max(128, (m // min_tiles) // 128 * 128))
    while m % tm != 0:
        tm -= 128
    return tm


def gemm_act(w_mat, p_mat, act, out_dtype=jnp.bfloat16):
    """act(w @ p), tiled over M on a 'parallel' grid axis (bn=False layers)."""
    cout, k = w_mat.shape
    _, m = p_mat.shape
    ob = jnp.dtype(out_dtype).itemsize
    per_col = 2 * (k * 2) + 2 * (cout * ob)   # double-buffered patch + out cols
    fixed = 2 * (cout * k * 2)                # weight block (double-buffered)
    tm = _pick_tm(m, per_col, fixed, _TILE_BUDGET,
                  min_tiles=2 if m >= 1024 else 1)
    return pl.pallas_call(
        functools.partial(_gemm_act_kernel, act=act),
        out_shape=jax.ShapeDtypeStruct((cout, m), out_dtype),
        grid=(m // tm,),
        in_specs=[
            pl.BlockSpec((cout, k), lambda i: (0, 0)),
            pl.BlockSpec((k, tm), lambda i: (0, i)),
        ],
        out_specs=pl.BlockSpec((cout, tm), lambda i: (0, i)),
        compiler_params=_compiler_params(("parallel",)),
    )(w_mat, p_mat)


def gemm_bn_act(w_mat, p_mat, act, out_dtype=jnp.bfloat16):
    """Fused GEMM + BatchNorm(batch stats) + act; two-pass tiled fallback."""
    cout, k = w_mat.shape
    _, m = p_mat.shape
    ob = jnp.dtype(out_dtype).itemsize

    fused_bytes = cout * k * 2 + k * m * 2 + cout * m * (ob + 4)
    if fused_bytes <= _FUSED_BN_BUDGET:
        return pl.pallas_call(
            functools.partial(_gemm_bn_act_kernel, act=act),
            out_shape=jax.ShapeDtypeStruct((cout, m), out_dtype),
            grid=(1,),
            in_specs=[
                pl.BlockSpec((cout, k), lambda i: (0, 0)),
                pl.BlockSpec((k, m), lambda i: (0, 0)),
            ],
            out_specs=pl.BlockSpec((cout, m), lambda i: (0, 0)),
            compiler_params=_compiler_params(("arbitrary",)),
        )(w_mat, p_mat)

    # Fallback (large M): single call, two passes over the same M tiles.
    per_col = 2 * (k * 2) + 2 * (cout * ob)
    fixed = 2 * (cout * k * 2) + 2 * (cout * 4)
    tm = _pick_tm(m, per_col, fixed, _TILE_BUDGET,
                  min_tiles=2 if m >= 1024 else 1)
    return pl.pallas_call(
        functools.partial(_gemm_bn_act_twopass_kernel, act=act, m_total=m),
        out_shape=jax.ShapeDtypeStruct((cout, m), out_dtype),
        grid=(2, m // tm),
        in_specs=[
            pl.BlockSpec((cout, k), lambda ph, i: (0, 0)),
            pl.BlockSpec((k, tm), lambda ph, i: (0, i)),
        ],
        out_specs=pl.BlockSpec((cout, tm), lambda ph, i: (0, i)),
        scratch_shapes=[pltpu.VMEM((cout, 1), jnp.float32),
                        pltpu.VMEM((cout, 1), jnp.float32)],
        compiler_params=_compiler_params(("arbitrary", "arbitrary")),
    )(w_mat, p_mat)


# ---------------------------------------------------------------------------
# Patch extraction (XLA glue) + conv blocks
# ---------------------------------------------------------------------------
def _patches(x, kh, kw, stride, pad, lhs_is_cnhw=True):
    """Channel-major patches (K, M): K = Cin*KH*KW, M = N*OH*OW (lane-dense)."""
    dn = ("CNHW" if lhs_is_cnhw else "NCHW", "OIHW", "CNHW")
    p = lax.conv_general_dilated_patches(
        x, filter_shape=(kh, kw), window_strides=(stride, stride),
        padding=((pad, pad), (pad, pad)), dimension_numbers=dn)
    k, n, oh, ow = p.shape
    return p.reshape(k, n * oh * ow), n, oh, ow


def conv_block(x, w_oihw, stride, pad, bn, act, lhs_is_cnhw=True):
    cout, cin, kh, kw = w_oihw.shape
    p, n, oh, ow = _patches(x, kh, kw, stride, pad, lhs_is_cnhw)
    # Patch K ordering is (Cin, KH, KW) -> weight reshape matches directly.
    w_mat = w_oihw.reshape(cout, cin * kh * kw).astype(jnp.bfloat16)
    y = (gemm_bn_act if bn else gemm_act)(w_mat, p, act, jnp.bfloat16)
    return y.reshape(cout, n, oh, ow)     # stays channel-major for next layer


def final_block(x3_cnhw, w4, w5):
    """Layers 4+5 fused into a single VMEM-resident pallas_call."""
    c4, c3, kh, kw = w4.shape
    p4, n, oh, ow = _patches(x3_cnhw, kh, kw, stride=2, pad=1)
    assert (w5.shape[2], w5.shape[3]) == (oh, ow), (
        "final 4x4 'valid' conv expects the penultimate map to match its "
        "kernel size (use 64x64 DCGAN inputs)")
    pix = oh * ow
    k4 = c3 * kh * kw

    w4_mat = w4.reshape(c4, k4).astype(jnp.bfloat16)
    w5_mat = w5.reshape(c4, pix).astype(jnp.float32)          # (C4, KH*KW)
    w5_tiled = jnp.tile(w5_mat, (1, n))                        # (C4, N*pix)
    sel = jnp.repeat(jnp.eye(n, dtype=jnp.float32), pix, axis=1)  # (N, N*pix)

    out = pl.pallas_call(
        _final_block_kernel,
        out_shape=jax.ShapeDtypeStruct((n, 1), jnp.float32),
        grid=(1,),
        in_specs=[
            pl.BlockSpec((c4, k4), lambda i: (0, 0)),
            pl.BlockSpec((k4, n * pix), lambda i: (0, 0)),
            pl.BlockSpec((c4, n * pix), lambda i: (0, 0)),
            pl.BlockSpec((n, n * pix), lambda i: (0, 0)),
        ],
        out_specs=pl.BlockSpec((n, 1), lambda i: (0, 0)),
        compiler_params=_compiler_params(("arbitrary",)),
    )(w4_mat, p4, w5_tiled, sel)
    return out.reshape(n, 1, 1, 1)


# ---------------------------------------------------------------------------
# Discriminator forward
# ---------------------------------------------------------------------------
def init_params(key, nc, ndf):
    shapes = [
        (ndf, nc, 4, 4),
        (ndf * 2, ndf, 4, 4),
        (ndf * 4, ndf * 2, 4, 4),
        (ndf * 8, ndf * 4, 4, 4),
        (1, ndf * 8, 4, 4),
    ]
    keys = jax.random.split(key, len(shapes))
    return [0.02 * jax.random.normal(k, s, dtype=jnp.float32)
            for k, s in zip(keys, shapes)]


def discriminator_forward(x_nchw, params):
    w1, w2, w3, w4, w5 = params
    x = x_nchw.astype(jnp.bfloat16)                 # bf16 before patch extraction
    a1 = conv_block(x, w1, stride=2, pad=1, bn=False, act="leaky",
                    lhs_is_cnhw=False)              # NCHW in, CNHW out
    a2 = conv_block(a1, w2, stride=2, pad=1, bn=True, act="leaky")
    a3 = conv_block(a2, w3, stride=2, pad=1, bn=True, act="leaky")
    return final_block(a3, w4, w5)                  # (N, 1, 1, 1) f32


if __name__ == "__main__":
    # DCGAN discriminator requires 64x64 spatial input (4x4 at the last conv).
    batch, nc, ndf, size = 2, 3, 8, 64

    key = jax.random.PRNGKey(0)
    k_x, k_w = jax.random.split(key)
    x = jax.random.normal(k_x, (batch, nc, size, size), dtype=jnp.float32)
    params = init_params(k_w, nc, ndf)

    fwd = jax.jit(discriminator_forward)
    out = jax.block_until_ready(fwd(x, params))

    assert out.shape == (batch, 1, 1, 1), out.shape
    assert bool(jnp.all(jnp.isfinite(out)))
    assert bool(jnp.all((out >= 0.0) & (out <= 1.0)))  # sigmoid range
    print("KERNEL_OK")
</pallas_src>

<mosaic_0001>
module attributes {stable_mosaic.version = 11 : i64} {
  func.func @_gemm_act_kernel(%arg0: i32, %arg1: memref<8x48xbf16, #tpu.memory_space<vmem>>, %arg2: memref<48x1024xbf16, #tpu.memory_space<vmem>>, %arg3: memref<8x1024xbf16, #tpu.memory_space<vmem>>) attributes {dimension_semantics = [#tpu.dimension_semantics<parallel>], iteration_bounds = array<i64: 2>, scalar_prefetch = 0 : i64, scratch_operands = 0 : i64, tpu.core_type = #tpu.core_type<tc>, window_params = [{pipeline_mode = #tpu.pipeline_mode<synchronous>, transform_indices = @transform_0, window_bounds = array<i64: 8, 48>}, {transform_indices = @transform_1, window_bounds = array<i64: 48, 1024>}, {transform_indices = @transform_2, window_bounds = array<i64: 8, 1024>}]} {
    %c0 = arith.constant 0 : index
    %c0_0 = arith.constant 0 : index
    %0 = vector.load %arg1[%c0, %c0_0] : memref<8x48xbf16, #tpu.memory_space<vmem>>, vector<8x48xbf16>
    %c0_1 = arith.constant 0 : index
    %c0_2 = arith.constant 0 : index
    %1 = vector.load %arg2[%c0_1, %c0_2] : memref<48x1024xbf16, #tpu.memory_space<vmem>>, vector<48x1024xbf16>
    %cst = arith.constant dense<0.000000e+00> : vector<8x1024xf32>
    %2 = tpu.matmul %0, %1, %cst {dimension_numbers = #tpu.dot_dimension_numbers<[1], [0], [0], [1], [0, 0, 1, 1], [], []>} : vector<8x48xbf16>, vector<48x1024xbf16>, vector<8x1024xf32> -> vector<8x1024xf32>
    %cst_3 = arith.constant 0.000000e+00 : f32
    %3 = vector.broadcast %cst_3 : f32 to vector<8x1024xf32>
    %4 = arith.cmpf oge, %2, %3 : vector<8x1024xf32>
    %cst_4 = arith.constant 2.000000e-01 : f32
    %5 = vector.broadcast %cst_4 : f32 to vector<8x1024xf32>
    %6 = arith.mulf %5, %2 : vector<8x1024xf32>
    %7 = arith.select %4, %2, %6 : vector<8x1024xi1>, vector<8x1024xf32>
    %8 = arith.truncf %7 : vector<8x1024xf32> to vector<8x1024xbf16>
    %c0_5 = arith.constant 0 : index
    %c0_6 = arith.constant 0 : index
    %9 = vector.load %arg3[%c0_5, %c0_6] : memref<8x1024xbf16, #tpu.memory_space<vmem>>, vector<8x1024xbf16>
    tpu.vector_store %arg3[%c0_5, %c0_6], %8 {strides = array<i32>} : memref<8x1024xbf16, #tpu.memory_space<vmem>>, vector<8x1024xbf16>,
    return
  }
  func.func @transform_0(%arg0: i32) -> (i32, i32) {
    %c0_i32 = arith.constant 0 : i32
    %c0_i32_0 = arith.constant 0 : i32
    %c0_i32_1 = arith.constant 0 : i32
    return %c0_i32, %c0_i32_0 : i32, i32
  }
  func.func @transform_1(%arg0: i32) -> (i32, i32) {
    %c0_i32 = arith.constant 0 : i32
    %c0_i32_0 = arith.constant 0 : i32
    return %c0_i32, %arg0 : i32, i32
  }
  func.func @transform_2(%arg0: i32) -> (i32, i32) {
    %c0_i32 = arith.constant 0 : i32
    %c0_i32_0 = arith.constant 0 : i32
    return %c0_i32, %arg0 : i32, i32
  }
}

module attributes {stable_mosaic.version = 11 : i64} {
  func.func @_gemm_bn_act_kernel(%arg0: i32, %arg1: memref<16x128xbf16, #tpu.memory_space<vmem>>, %arg2: memref<128x512xbf16, #tpu.memory_space<vmem>>, %arg3: memref<16x512xbf16, #tpu.memory_space<vmem>>) attributes {dimension_semantics = [#tpu.dimension_semantics<arbitrary>], iteration_bounds = array<i64: 1>, scalar_prefetch = 0 : i64, scratch_operands = 0 : i64, tpu.core_type = #tpu.core_type<tc>, window_params = [{pipeline_mode = #tpu.pipeline_mode<synchronous>, transform_indices = @transform_0, window_bounds = array<i64: 16, 128>}, {pipeline_mode = #tpu.pipeline_mode<synchronous>, transform_indices = @transform_1, window_bounds = array<i64: 128, 512>}, {pipeline_mode = #tpu.pipeline_mode<synchronous>, transform_indices = @transform_2, window_bounds = array<i64: 16, 512>}]} {
    %c0 = arith.constant 0 : index
    %c0_0 = arith.constant 0 : index
    %0 = vector.load %arg1[%c0, %c0_0] : memref<16x128xbf16, #tpu.memory_space<vmem>>, vector<16x128xbf16>
    %c0_1 = arith.constant 0 : index
    %c0_2 = arith.constant 0 : index
    %1 = vector.load %arg2[%c0_1, %c0_2] : memref<128x512xbf16, #tpu.memory_space<vmem>>, vector<128x512xbf16>
    %cst = arith.constant dense<0.000000e+00> : vector<16x512xf32>
    %2 = tpu.matmul %0, %1, %cst {dimension_numbers = #tpu.dot_dimension_numbers<[1], [0], [0], [1], [0, 0, 1, 1], [], []>} : vector<16x128xbf16>, vector<128x512xbf16>, vector<16x512xf32> -> vector<16x512xf32>
    %cst_3 = arith.constant dense<0.000000e+00> : vector<16xf32>
    %3 = vector.multi_reduction <add>, %2, %cst_3 [1] : vector<16x512xf32> to vector<16xf32>
    %4 = vector.shape_cast %3 : vector<16xf32> to vector<16x1xf32>
    %cst_4 = arith.constant 5.120000e+02 : f32
    %5 = vector.broadcast %cst_4 : f32 to vector<16x1xf32>
    %6 = arith.divf %4, %5 : vector<16x1xf32>
    %7 = arith.mulf %2, %2 : vector<16x512xf32>
    %cst_5 = arith.constant dense<0.000000e+00> : vector<16xf32>
    %8 = vector.multi_reduction <add>, %7, %cst_5 [1] : vector<16x512xf32> to vector<16xf32>
    %9 = vector.shape_cast %8 : vector<16xf32> to vector<16x1xf32>
    %cst_6 = arith.constant 5.120000e+02 : f32
    %10 = vector.broadcast %cst_6 : f32 to vector<16x1xf32>
    %11 = arith.divf %9, %10 : vector<16x1xf32>
    %12 = arith.mulf %6, %6 : vector<16x1xf32>
    %13 = arith.subf %11, %12 : vector<16x1xf32>
    %cst_7 = arith.constant 0.000000e+00 : f32
    %14 = vector.broadcast %cst_7 : f32 to vector<16x1xf32>
    %15 = arith.maximumf %13, %14 : vector<16x1xf32>
    %cst_8 = arith.constant 9.99999974E-6 : f32
    %16 = vector.broadcast %cst_8 : f32 to vector<16x1xf32>
    %17 = arith.addf %15, %16 : vector<16x1xf32>
    %18 = math.rsqrt %17 : vector<16x1xf32>
    %19 = vector.broadcast %6 : vector<16x1xf32> to vector<16x512xf32>
    %20 = arith.subf %2, %19 : vector<16x512xf32>
    %21 = vector.broadcast %18 : vector<16x1xf32> to vector<16x512xf32>
    %22 = arith.mulf %20, %21 : vector<16x512xf32>
    %cst_9 = arith.constant 0.000000e+00 : f32
    %23 = vector.broadcast %cst_9 : f32 to vector<16x512xf32>
    %24 = arith.cmpf oge, %22, %23 : vector<16x512xf32>
    %cst_10 = arith.constant 2.000000e-01 : f32
    %25 = vector.broadcast %cst_10 : f32 to vector<16x512xf32>
    %26 = arith.mulf %25, %22 : vector<16x512xf32>
    %27 = arith.select %24, %22, %26 : vector<16x512xi1>, vector<16x512xf32>
    %28 = arith.truncf %27 : vector<16x512xf32> to vector<16x512xbf16>
    %c0_11 = arith.constant 0 : index
    %c0_12 = arith.constant 0 : index
    %29 = vector.load %arg3[%c0_11, %c0_12] : memref<16x512xbf16, #tpu.memory_space<vmem>>, vector<16x512xbf16>
    tpu.vector_store %arg3[%c0_11, %c0_12], %28 {strides = array<i32>} : memref<16x512xbf16, #tpu.memory_space<vmem>>, vector<16x512xbf16>,
    return
  }
  func.func @transform_0(%arg0: i32) -> (i32, i32) {
    %c0_i32 = arith.constant 0 : i32
    %c0_i32_0 = arith.constant 0 : i32
    %c0_i32_1 = arith.constant 0 : i32
    return %c0_i32, %c0_i32_0 : i32, i32
  }
  func.func @transform_1(%arg0: i32) -> (i32, i32) {
    %c0_i32 = arith.constant 0 : i32
    %c0_i32_0 = arith.constant 0 : i32
    %c0_i32_1 = arith.constant 0 : i32
    return %c0_i32, %c0_i32_0 : i32, i32
  }
  func.func @transform_2(%arg0: i32) -> (i32, i32) {
    %c0_i32 = arith.constant 0 : i32
    %c0_i32_0 = arith.constant 0 : i32
    %c0_i32_1 = arith.constant 0 : i32
    return %c0_i32, %c0_i32_0 : i32, i32
  }
}

module attributes {stable_mosaic.version = 11 : i64} {
  func.func @_gemm_bn_act_kernel(%arg0: i32, %arg1: memref<32x256xbf16, #tpu.memory_space<vmem>>, %arg2: memref<256x128xbf16, #tpu.memory_space<vmem>>, %arg3: memref<32x128xbf16, #tpu.memory_space<vmem>>) attributes {dimension_semantics = [#tpu.dimension_semantics<arbitrary>], iteration_bounds = array<i64: 1>, scalar_prefetch = 0 : i64, scratch_operands = 0 : i64, tpu.core_type = #tpu.core_type<tc>, window_params = [{pipeline_mode = #tpu.pipeline_mode<synchronous>, transform_indices = @transform_0, window_bounds = array<i64: 32, 256>}, {pipeline_mode = #tpu.pipeline_mode<synchronous>, transform_indices = @transform_1, window_bounds = array<i64: 256, 128>}, {pipeline_mode = #tpu.pipeline_mode<synchronous>, transform_indices = @transform_2, window_bounds = array<i64: 32, 128>}]} {
    %c0 = arith.constant 0 : index
    %c0_0 = arith.constant 0 : index
    %0 = vector.load %arg1[%c0, %c0_0] : memref<32x256xbf16, #tpu.memory_space<vmem>>, vector<32x256xbf16>
    %c0_1 = arith.constant 0 : index
    %c0_2 = arith.constant 0 : index
    %1 = vector.load %arg2[%c0_1, %c0_2] : memref<256x128xbf16, #tpu.memory_space<vmem>>, vector<256x128xbf16>
    %cst = arith.constant dense<0.000000e+00> : vector<32x128xf32>
    %2 = tpu.matmul %0, %1, %cst {dimension_numbers = #tpu.dot_dimension_numbers<[1], [0], [0], [1], [0, 0, 1, 1], [], []>} : vector<32x256xbf16>, vector<256x128xbf16>, vector<32x128xf32> -> vector<32x128xf32>
    %cst_3 = arith.constant dense<0.000000e+00> : vector<32xf32>
    %3 = vector.multi_reduction <add>, %2, %cst_3 [1] : vector<32x128xf32> to vector<32xf32>
    %4 = vector.shape_cast %3 : vector<32xf32> to vector<32x1xf32>
    %cst_4 = arith.constant 1.280000e+02 : f32
    %5 = vector.broadcast %cst_4 : f32 to vector<32x1xf32>
    %6 = arith.divf %4, %5 : vector<32x1xf32>
    %7 = arith.mulf %2, %2 : vector<32x128xf32>
    %cst_5 = arith.constant dense<0.000000e+00> : vector<32xf32>
    %8 = vector.multi_reduction <add>, %7, %cst_5 [1] : vector<32x128xf32> to vector<32xf32>
    %9 = vector.shape_cast %8 : vector<32xf32> to vector<32x1xf32>
    %cst_6 = arith.constant 1.280000e+02 : f32
    %10 = vector.broadcast %cst_6 : f32 to vector<32x1xf32>
    %11 = arith.divf %9, %10 : vector<32x1xf32>
    %12 = arith.mulf %6, %6 : vector<32x1xf32>
    %13 = arith.subf %11, %12 : vector<32x1xf32>
    %cst_7 = arith.constant 0.000000e+00 : f32
    %14 = vector.broadcast %cst_7 : f32 to vector<32x1xf32>
    %15 = arith.maximumf %13, %14 : vector<32x1xf32>
    %cst_8 = arith.constant 9.99999974E-6 : f32
    %16 = vector.broadcast %cst_8 : f32 to vector<32x1xf32>
    %17 = arith.addf %15, %16 : vector<32x1xf32>
    %18 = math.rsqrt %17 : vector<32x1xf32>
    %19 = vector.broadcast %6 : vector<32x1xf32> to vector<32x128xf32>
    %20 = arith.subf %2, %19 : vector<32x128xf32>
    %21 = vector.broadcast %18 : vector<32x1xf32> to vector<32x128xf32>
    %22 = arith.mulf %20, %21 : vector<32x128xf32>
    %cst_9 = arith.constant 0.000000e+00 : f32
    %23 = vector.broadcast %cst_9 : f32 to vector<32x128xf32>
    %24 = arith.cmpf oge, %22, %23 : vector<32x128xf32>
    %cst_10 = arith.constant 2.000000e-01 : f32
    %25 = vector.broadcast %cst_10 : f32 to vector<32x128xf32>
    %26 = arith.mulf %25, %22 : vector<32x128xf32>
    %27 = arith.select %24, %22, %26 : vector<32x128xi1>, vector<32x128xf32>
    %28 = arith.truncf %27 : vector<32x128xf32> to vector<32x128xbf16>
    %c0_11 = arith.constant 0 : index
    %c0_12 = arith.constant 0 : index
    %29 = vector.load %arg3[%c0_11, %c0_12] : memref<32x128xbf16, #tpu.memory_space<vmem>>, vector<32x128xbf16>
    tpu.vector_store %arg3[%c0_11, %c0_12], %28 {strides = array<i32>} : memref<32x128xbf16, #tpu.memory_space<vmem>>, vector<32x128xbf16>,
    return
  }
  func.func @transform_0(%arg0: i32) -> (i32, i32) {
    %c0_i32 = arith.constant 0 : i32
    %c0_i32_0 = arith.constant 0 : i32
    %c0_i32_1 = arith.constant 0 : i32
    return %c0_i32, %c0_i32_0 : i32, i32
  }
  func.func @transform_1(%arg0: i32) -> (i32, i32) {
    %c0_i32 = arith.constant 0 : i32
    %c0_i32_0 = arith.constant 0 : i32
    %c0_i32_1 = arith.constant 0 : i32
    return %c0_i32, %c0_i32_0 : i32, i32
  }
  func.func @transform_2(%arg0: i32) -> (i32, i32) {
    %c0_i32 = arith.constant 0 : i32
    %c0_i32_0 = arith.constant 0 : i32
    %c0_i32_1 = arith.constant 0 : i32
    return %c0_i32, %c0_i32_0 : i32, i32
  }
}

module attributes {stable_mosaic.version = 11 : i64} {
  func.func @_final_block_kernel(%arg0: i32, %arg1: memref<64x512xbf16, #tpu.memory_space<vmem>>, %arg2: memref<512x32xbf16, #tpu.memory_space<vmem>>, %arg3: memref<64x32xf32, #tpu.memory_space<vmem>>, %arg4: memref<2x32xf32, #tpu.memory_space<vmem>>, %arg5: memref<2x1xf32, #tpu.memory_space<vmem>>) attributes {dimension_semantics = [#tpu.dimension_semantics<arbitrary>], iteration_bounds = array<i64: 1>, scalar_prefetch = 0 : i64, scratch_operands = 0 : i64, tpu.core_type = #tpu.core_type<tc>, window_params = [{pipeline_mode = #tpu.pipeline_mode<synchronous>, transform_indices = @transform_0, window_bounds = array<i64: 64, 512>}, {pipeline_mode = #tpu.pipeline_mode<synchronous>, transform_indices = @transform_1, window_bounds = array<i64: 512, 32>}, {pipeline_mode = #tpu.pipeline_mode<synchronous>, transform_indices = @transform_2, window_bounds = array<i64: 64, 32>}, {pipeline_mode = #tpu.pipeline_mode<synchronous>, transform_indices = @transform_3, window_bounds = array<i64: 2, 32>}, {pipeline_mode = #tpu.pipeline_mode<synchronous>, transform_indices = @transform_4, window_bounds = array<i64: 2, 1>}]} {
    %c0 = arith.constant 0 : index
    %c0_0 = arith.constant 0 : index
    %0 = vector.load %arg1[%c0, %c0_0] : memref<64x512xbf16, #tpu.memory_space<vmem>>, vector<64x512xbf16>
    %c0_1 = arith.constant 0 : index
    %c0_2 = arith.constant 0 : index
    %1 = vector.load %arg2[%c0_1, %c0_2] : memref<512x32xbf16, #tpu.memory_space<vmem>>, vector<512x32xbf16>
    %cst = arith.constant dense<0.000000e+00> : vector<64x32xf32>
    %2 = tpu.matmul %0, %1, %cst {dimension_numbers = #tpu.dot_dimension_numbers<[1], [0], [0], [1], [0, 0, 1, 1], [], []>} : vector<64x512xbf16>, vector<512x32xbf16>, vector<64x32xf32> -> vector<64x32xf32>
    %cst_3 = arith.constant dense<0.000000e+00> : vector<64xf32>
    %3 = vector.multi_reduction <add>, %2, %cst_3 [1] : vector<64x32xf32> to vector<64xf32>
    %4 = vector.shape_cast %3 : vector<64xf32> to vector<64x1xf32>
    %cst_4 = arith.constant 3.200000e+01 : f32
    %5 = vector.broadcast %cst_4 : f32 to vector<64x1xf32>
    %6 = arith.divf %4, %5 : vector<64x1xf32>
    %7 = arith.mulf %2, %2 : vector<64x32xf32>
    %cst_5 = arith.constant dense<0.000000e+00> : vector<64xf32>
    %8 = vector.multi_reduction <add>, %7, %cst_5 [1] : vector<64x32xf32> to vector<64xf32>
    %9 = vector.shape_cast %8 : vector<64xf32> to vector<64x1xf32>
    %cst_6 = arith.constant 3.200000e+01 : f32
    %10 = vector.broadcast %cst_6 : f32 to vector<64x1xf32>
    %11 = arith.divf %9, %10 : vector<64x1xf32>
    %12 = arith.mulf %6, %6 : vector<64x1xf32>
    %13 = arith.subf %11, %12 : vector<64x1xf32>
    %cst_7 = arith.constant 0.000000e+00 : f32
    %14 = vector.broadcast %cst_7 : f32 to vector<64x1xf32>
    %15 = arith.maximumf %13, %14 : vector<64x1xf32>
    %16 = vector.broadcast %6 : vector<64x1xf32> to vector<64x32xf32>
    %17 = arith.subf %2, %16 : vector<64x32xf32>
    %cst_8 = arith.constant 9.99999974E-6 : f32
    %18 = vector.broadcast %cst_8 : f32 to vector<64x1xf32>
    %19 = arith.addf %15, %18 : vector<64x1xf32>
    %20 = math.rsqrt %19 : vector<64x1xf32>
    %21 = vector.broadcast %20 : vector<64x1xf32> to vector<64x32xf32>
    %22 = arith.mulf %17, %21 : vector<64x32xf32>
    %cst_9 = arith.constant 0.000000e+00 : f32
    %23 = vector.broadcast %cst_9 : f32 to vector<64x32xf32>
    %24 = arith.cmpf oge, %22, %23 : vector<64x32xf32>
    %cst_10 = arith.constant 2.000000e-01 : f32
    %25 = vector.broadcast %cst_10 : f32 to vector<64x32xf32>
    %26 = arith.mulf %25, %22 : vector<64x32xf32>
    %27 = arith.select %24, %22, %26 : vector<64x32xi1>, vector<64x32xf32>
    %c0_11 = arith.constant 0 : index
    %c0_12 = arith.constant 0 : index
    %28 = vector.load %arg3[%c0_11, %c0_12] : memref<64x32xf32, #tpu.memory_space<vmem>>, vector<64x32xf32>
    %29 = arith.mulf %27, %28 : vector<64x32xf32>
    %cst_13 = arith.constant dense<0.000000e+00> : vector<32xf32>
    %30 = vector.multi_reduction <add>, %29, %cst_13 [0] : vector<64x32xf32> to vector<32xf32>
    %31 = vector.shape_cast %30 : vector<32xf32> to vector<1x32xf32>
    %c0_14 = arith.constant 0 : index
    %c0_15 = arith.constant 0 : index
    %32 = vector.load %arg4[%c0_14, %c0_15] : memref<2x32xf32, #tpu.memory_space<vmem>>, vector<2x32xf32>
    %33 = vector.broadcast %31 : vector<1x32xf32> to vector<2x32xf32>
    %34 = arith.mulf %32, %33 : vector<2x32xf32>
    %cst_16 = arith.constant dense<0.000000e+00> : vector<2xf32>
    %35 = vector.multi_reduction <add>, %34, %cst_16 [1] : vector<2x32xf32> to vector<2xf32>
    %36 = vector.shape_cast %35 : vector<2xf32> to vector<2x1xf32>
    %37 = arith.negf %36 : vector<2x1xf32>
    %38 = math.exp %37 : vector<2x1xf32>
    %cst_17 = arith.constant 1.000000e+00 : f32
    %39 = vector.broadcast %cst_17 : f32 to vector<2x1xf32>
    %40 = arith.addf %39, %38 : vector<2x1xf32>
    %41 = arith.divf %39, %40 : vector<2x1xf32>
    %c0_18 = arith.constant 0 : index
    %c0_19 = arith.constant 0 : index
    %42 = vector.load %arg5[%c0_18, %c0_19] : memref<2x1xf32, #tpu.memory_space<vmem>>, vector<2x1xf32>
    tpu.vector_store %arg5[%c0_18, %c0_19], %41 {strides = array<i32>} : memref<2x1xf32, #tpu.memory_space<vmem>>, vector<2x1xf32>,
    return
  }
  func.func @transform_0(%arg0: i32) -> (i32, i32) {
    %c0_i32 = arith.constant 0 : i32
    %c0_i32_0 = arith.constant 0 : i32
    %c0_i32_1 = arith.constant 0 : i32
    return %c0_i32, %c0_i32_0 : i32, i32
  }
  func.func @transform_1(%arg0: i32) -> (i32, i32) {
    %c0_i32 = arith.constant 0 : i32
    %c0_i32_0 = arith.constant 0 : i32
    %c0_i32_1 = arith.constant 0 : i32
    return %c0_i32, %c0_i32_0 : i32, i32
  }
  func.func @transform_2(%arg0: i32) -> (i32, i32) {
    %c0_i32 = arith.constant 0 : i32
    %c0_i32_0 = arith.constant 0 : i32
    %c0_i32_1 = arith.constant 0 : i32
    return %c0_i32, %c0_i32_0 : i32, i32
  }
  func.func @transform_3(%arg0: i32) -> (i32, i32) {
    %c0_i32 = arith.constant 0 : i32
    %c0_i32_0 = arith.constant 0 : i32
    %c0_i32_1 = arith.constant 0 : i32
    return %c0_i32, %c0_i32_0 : i32, i32
  }
  func.func @transform_4(%arg0: i32) -> (i32, i32) {
    %c0_i32 = arith.constant 0 : i32
    %c0_i32_0 = arith.constant 0 : i32
    %c0_i32_1 = arith.constant 0 : i32
    return %c0_i32, %c0_i32_0 : i32, i32
  }
}

</mosaic_0001>

<bundles_post_ra>
// kernel: discriminator_forward.4
= control target key start
LH: loop header
LB: loop body
LE: loop exit
PB: predicated region body
PF: predicated region fallthrough
CT: control target
= control target key end

     0   :  { %s763_s9 = smov 0   ;;  %s765_s10 = smov 0   ;;  %s910_s0 = inlined_call_operand.vmem [shape: bf16[8,48], index: 0, kind: input, shape index: {}]   ;;  %s911_s1 = inlined_call_operand.vmem [shape: bf16[48,2048], index: 1, kind: input, shape index: {}]   ;;  %s912_s2 = inlined_call_operand.vmem [shape: bf16[8,2048], index: 2, kind: output, shape index: {}]  }
   0x1   :  { %s767_s11 = smov 0  }
   0x2 LB: > { %s648_s12 = sadd.s32 4294967295, %s745_s11   ;;  %s780_s13 = sadd.s32 1, %s745_s11   ;;  %s745_s11 = sphi %s767_s11, %s915_s11   ;;  %s741_s10 = sphi %s765_s10, %s914_s10   ;;  %s737_s9 = sphi %s763_s9, %s913_s9  }
   0x3   : > { %s37_s14 = ssub.s32 %s745_s11, %s780_s13  ;;  %s40_s15 = sadd.s32 1, %s741_s10 }
   0x4   : > { %p38_p0 = scmp.eq.s32.totalorder %s37_s14, 0  ;;  %p47_p1 = scmp.ne.s32.totalorder %s741_s10, %s737_s9 }
   0x5   : > { %p48_p2 = scmp.eq.s32.totalorder %s745_s11, 0  ;;  %p651_p4 = scmp.ge.s32.totalorder %s745_s11, 2 }
   0x6   : > { %s789_s16 = scalar_select %p38_p0, %s741_s10, %s40_s15  }
   0x7   : > { %p49_p3 = por %p48_p2, %p47_p1  ;;  %102 = sbr.rel (%p651_p4) target bundleno = 31 (0x1f), region = 20 }
   0xe   : > { %105 = sbr.rel (!%p49_p3) target bundleno = 31 (0x1f), region = 24  ;;  %s107_s17 = sand.u32 (%p49_p3), 1, %s741_s10  }
   0xf   : > { %s691_s18 = sshll.u32 (%p49_p3), %s745_s11, 5  ;;  %s696_s19 = smul.u32 (%p49_p3), 192, %s107_s17 }
  0x10   : > { %s797_s22 = scalar_lea.vmem (%p49_p3), %s911_s1, %s691_s18 }
  0x11   : > { %v125_v0 = vld [vmem:[%s797_s22] sm:$0xff] (%p49_p3)  ;;  %v127_v1 = vld [vmem:[%s797_s22 + $0x8] sm:$0xff] (%p49_p3)  ;;  %v129_v2 = vld [vmem:[%s797_s22 + $0x10] sm:$0xff] (%p49_p3)  ;;  %s805_s23 = scalar_lea.vmem (%p49_p3), [#allocation2], %s696_s19 }
  0x12   : > { %v131_v3 = vld [vmem:[%s797_s22 + $0x18] sm:$0xff] (%p49_p3)  ;;  %v133_v4 = vld [vmem:[%s797_s22 + $0x40] sm:$0xff] (%p49_p3)  ;;  %v135_v5 = vld [vmem:[%s797_s22 + $0x48] sm:$0xff] (%p49_p3)  ;;  %126 = vst [vmem:[%s805_s23] sm:$0xff] (%p49_p3), %v125_v0 }
  0x13   : > { %128 = vst [vmem:[%s805_s23 + $0x8] sm:$0xff] (%p49_p3), %v127_v1  ;;  %130 = vst [vmem:[%s805_s23 + $0x10] sm:$0xff] (%p49_p3), %v129_v2  ;;  %v137_v6 = vld [vmem:[%s797_s22 + $0x50] sm:$0xff] (%p49_p3)  ;;  %v139_v7 = vld [vmem:[%s797_s22 + $0x58] sm:$0xff] (%p49_p3) }
  0x14   : > { %132 = vst [vmem:[%s805_s23 + $0x18] sm:$0xff] (%p49_p3), %v131_v3  ;;  %134 = vst [vmem:[%s805_s23 + $0x20] sm:$0xff] (%p49_p3), %v133_v4  ;;  %v141_v8 = vld [vmem:[%s797_s22 + $0x80] sm:$0xff] (%p49_p3)  ;;  %v143_v9 = vld [vmem:[%s797_s22 + $0x88] sm:$0xff] (%p49_p3) }
  0x15   : > { %136 = vst [vmem:[%s805_s23 + $0x28] sm:$0xff] %v135_v5  ;;  %138 = vst [vmem:[%s805_s23 + $0x30] sm:$0xff] %v137_v6  ;;  %v145_v10 = vld [vmem:[%s797_s22 + $0x90] sm:$0xff]  ;;  %v147_v11 = vld [vmem:[%s797_s22 + $0x98] sm:$0xff] }
  0x16   : > { %140 = vst [vmem:[%s805_s23 + $0x38] sm:$0xff] %v139_v7  ;;  %142 = vst [vmem:[%s805_s23 + $0x40] sm:$0xff] %v141_v8  ;;  %v149_v12 = vld [vmem:[%s797_s22 + $0xc0] sm:$0xff]  ;;  %v151_v13 = vld [vmem:[%s797_s22 + $0xc8] sm:$0xff] }
  0x17   : > { %144 = vst [vmem:[%s805_s23 + $0x48] sm:$0xff] %v143_v9  ;;  %146 = vst [vmem:[%s805_s23 + $0x50] sm:$0xff] %v145_v10  ;;  %v153_v14 = vld [vmem:[%s797_s22 + $0xd0] sm:$0xff]  ;;  %v155_v15 = vld [vmem:[%s797_s22 + $0xd8] sm:$0xff] }
  0x18   : > { %148 = vst [vmem:[%s805_s23 + $0x58] sm:$0xff] %v147_v11  ;;  %150 = vst [vmem:[%s805_s23 + $0x60] sm:$0xff] %v149_v12  ;;  %v157_v16 = vld [vmem:[%s797_s22 + $0x100] sm:$0xff]  ;;  %v159_v17 = vld [vmem:[%s797_s22 + $0x108] sm:$0xff] }
  0x19   : > { %152 = vst [vmem:[%s805_s23 + $0x68] sm:$0xff] %v151_v13  ;;  %154 = vst [vmem:[%s805_s23 + $0x70] sm:$0xff] %v153_v14  ;;  %v161_v18 = vld [vmem:[%s797_s22 + $0x110] sm:$0xff]  ;;  %v163_v19 = vld [vmem:[%s797_s22 + $0x118] sm:$0xff] }
  0x1a   : > { %156 = vst [vmem:[%s805_s23 + $0x78] sm:$0xff] %v155_v15  ;;  %158 = vst [vmem:[%s805_s23 + $0x80] sm:$0xff] %v157_v16  ;;  %v165_v20 = vld [vmem:[%s797_s22 + $0x140] sm:$0xff]  ;;  %v167_v21 = vld [vmem:[%s797_s22 + $0x148] sm:$0xff] }
  0x1b   : > { %160 = vst [vmem:[%s805_s23 + $0x88] sm:$0xff] %v159_v17  ;;  %162 = vst [vmem:[%s805_s23 + $0x90] sm:$0xff] %v161_v18  ;;  %v169_v22 = vld [vmem:[%s797_s22 + $0x150] sm:$0xff]  ;;  %v171_v23 = vld [vmem:[%s797_s22 + $0x158] sm:$0xff] }
  0x1c   : > { %164 = vst [vmem:[%s805_s23 + $0x98] sm:$0xff] %v163_v19  ;;  %166 = vst [vmem:[%s805_s23 + $0xa0] sm:$0xff] %v165_v20 }
  0x1d   : > { %168 = vst [vmem:[%s805_s23 + $0xa8] sm:$0xff] %v167_v21  ;;  %170 = vst [vmem:[%s805_s23 + $0xb0] sm:$0xff] %v169_v22 }
  0x1e   : > { %172 = vst [vmem:[%s805_s23 + $0xb8] sm:$0xff] %v171_v23 }
  0x1f PF: > { %p654_p5 = scmp.ge.s32.totalorder %s745_s11, 1  ;;  %p177_p6 = scmp.lt.s32.totalorder %s745_s11, 3 }
  0x21   : > { %p178_p7 = pnand %p654_p5, %p177_p6 }
  0x22   : > { %s184_s24 = sand.u32 (!%p178_p7), 1, %s737_s9   ;;  %v747_v24 = vmov (!%p178_p7), 0   ;;  %v213_v59 = vld [vmem:[%s910_s0] sm:$0xf] (!%p178_p7)  ;;  %vm358_vm0 = vcmask (!%p178_p7), 392192   ;;  %s655_s29 = sshll.u32 (!%p178_p7), %s648_s12, 3 }
  0x23   : > { %181 = sbr.rel (%p178_p7) target bundleno = 287 (0x11f), region = 47  ;;  %394 = vmatprep.mubr.bf16.mxu0 (!%p178_p7), %v747_v24  ;;  %435 = vmatprep.mubr.bf16.mxu1 (!%p178_p7), %v747_v24  ;;  %p207_p8 = scmp.lt.s32.totalorder (!%p178_p7), %s655_s29, 15 }
  0x24   : > { %s697_s25 = smul.u32 (!%p178_p7), 192, %s184_s24 }
  0x26   : > { %s854_s26 = scalar_lea.vmem (!%p178_p7), [#allocation2], %s697_s25 }
  0x27   : > { %v214_v25 = vld [vmem:[%s854_s26] sm:$0xff] (!%p178_p7)  ;;  %v215_v27 = vld [vmem:[%s854_s26 + $0x8] sm:$0xff] (!%p178_p7)  ;;  %v216_v47 = vld [vmem:[%s854_s26 + $0x10] sm:$0xff] (!%p178_p7) }
  0x28   : > { %v218_v26 = vld [vmem:[%s854_s26 + $0x20] sm:$0xff] (!%p178_p7)  ;;  %v219_v29 = vld [vmem:[%s854_s26 + $0x28] sm:$0xff] (!%p178_p7)  ;;  %v220_v48 = vld [vmem:[%s854_s26 + $0x30] sm:$0xff] (!%p178_p7) }
  0x29   : > { %v658_v28 = vcombine.high (!%p178_p7), %v214_v25, %v218_v26  ;;  %v657_v30 = vcombine.low (!%p178_p7), %v214_v25, %v218_v26  ;;  %v222_v31 = vld [vmem:[%s854_s26 + $0x40] sm:$0xff] (!%p178_p7)  ;;  %v660_v33 = vcombine.high (!%p178_p7), %v215_v27, %v219_v29  ;;  %v659_v34 = vcombine.low (!%p178_p7), %v215_v27, %v219_v29  ;;  %v223_v36 = vld [vmem:[%s854_s26 + $0x48] sm:$0xff] (!%p178_p7)  ;;  %v217_v49 = vld [vmem:[%s854_s26 + $0x18] sm:$0xff] (!%p178_p7) }
  0x2a   : > { %v226_v32 = vld [vmem:[%s854_s26 + $0x60] sm:$0xff]  ;;  %v227_v37 = vld [vmem:[%s854_s26 + $0x68] sm:$0xff]  ;;  %v221_v50 = vld [vmem:[%s854_s26 + $0x38] sm:$0xff]  ;;  %v662_v53 = vcombine.high %v216_v47, %v220_v48  ;;  %v661_v60 = vcombine.low %v216_v47, %v220_v48  ;;  %s917_s29 = smov (!%p207_p8, %s655_s29), 15 }
  0x2b   : > { %v666_v35 = vcombine.high %v222_v31, %v226_v32  ;;  %v230_v38 = vld [vmem:[%s854_s26 + $0x80] sm:$0xff]  ;;  %362 = vmatprep.subr.bf16.mxu0 %v658_v28  ;;  %v668_v39 = vcombine.high %v223_v36, %v227_v37  ;;  %v231_v41 = vld [vmem:[%s854_s26 + $0x88] sm:$0xff]  ;;  %403 = vmatprep.subr.bf16.mxu1 %v660_v33  ;;  %v665_v43 = vcombine.low %v222_v31, %v226_v32  ;;  %v224_v55 = vld [vmem:[%s854_s26 + $0x50] sm:$0xff]  ;;  %s656_s30 = sshll.u32 %s917_s29, 2 }
  0x2c   : > { %v234_v40 = vld [vmem:[%s854_s26 + $0xa0] sm:$0xff]  ;;  %v235_v42 = vld [vmem:[%s854_s26 + $0xa8] sm:$0xff]  ;;  %363 = vmatpush1.bf16.msra.mxu0 %v657_v30  ;;  %404 = vmatpush1.bf16.msra.mxu1 %v659_v34  ;;  %v667_v44 = vcombine.low %v223_v36, %v227_v37  ;;  %v664_v54 = vcombine.high %v217_v49, %v221_v50  ;;  %v228_v56 = vld [vmem:[%s854_s26 + $0x70] sm:$0xff]  ;;  %v663_v61 = vcombine.low %v217_v49, %v221_v50  ;;  %s894_s5 = scalar_lea.vmem %s912_s2, %s656_s30 }
  0x2d   : > { %364 = vmatprep.subr.bf16.mxu0 %v666_v35  ;;  %v674_v45 = vcombine.high %v230_v38, %v234_v40  ;;  %405 = vmatprep.subr.bf16.mxu1 %v668_v39  ;;  %v676_v46 = vcombine.high %v231_v41, %v235_v42  ;;  %v673_v51 = vcombine.low %v230_v38, %v234_v40  ;;  %v225_v57 = vld [vmem:[%s854_s26 + $0x58] sm:$0xff]  ;;  %v232_v0 = vld [vmem:[%s854_s26 + $0x90] sm:$0xff] }
  0x2e   : > { %v675_v52 = vcombine.low %v231_v41, %v235_v42  ;;  %v229_v58 = vld [vmem:[%s854_s26 + $0x78] sm:$0xff]  ;;  %v670_v62 = vcombine.high %v224_v55, %v228_v56  ;;  %v236_v1 = vld [vmem:[%s854_s26 + $0xb0] sm:$0xff]  ;;  %v669_v4 = vcombine.low %v224_v55, %v228_v56 }
  0x2f   : > { %v672_v63 = vcombine.high %v225_v57, %v229_v58  ;;  %v233_v2 = vld [vmem:[%s854_s26 + $0x98] sm:$0xff]  ;;  %v671_v5 = vcombine.low %v225_v57, %v229_v58  ;;  %v678_v6 = vcombine.high %v232_v0, %v236_v1  ;;  %v677_v8 = vcombine.low %v232_v0, %v236_v1 }
  0x30   : > { %365 = vmatpush1.bf16.msra.mxu0 %v665_v43  ;;  %406 = vmatpush1.bf16.msra.mxu1 %v667_v44  ;;  %v237_v3 = vld [vmem:[%s854_s26 + $0xb8] sm:$0xff] }
  0x31   : > { %366 = vmatprep.subr.bf16.mxu0 %v674_v45  ;;  %407 = vmatprep.subr.bf16.mxu1 %v676_v46  ;;  %v680_v7 = vcombine.high %v233_v2, %v237_v3  ;;  %v679_v9 = vcombine.low %v233_v2, %v237_v3 }
  0x34   : > { %367 = vmatpush1.bf16.msra.mxu0 %v673_v51  ;;  %408 = vmatpush1.bf16.msra.mxu1 %v675_v52 }
  0x35   : > { %444 = vmatprep.subr.bf16.mxu0 %v662_v53  ;;  %485 = vmatprep.subr.bf16.mxu1 %v664_v54 }
  0x37   : > { %681 = vmatmul.mubr.msk.bf16.vlgmr.msra.gmra.mrb[0].mxu0 %vm358_vm0, %v213_v59  ;;  %682 = vmatmul.mubr.msk.bf16.vlgmr.msra.gmra.mrb[0].mxu1 %vm358_vm0, %v213_v59 }
  0x38   : > { %445 = vmatpush1.bf16.msra.mxu0 %v661_v60  ;;  %486 = vmatpush1.bf16.msra.mxu1 %v663_v61 }
  0x39   : > { %446 = vmatprep.subr.bf16.mxu0 %v670_v62  ;;  %487 = vmatprep.subr.bf16.mxu1 %v672_v63 }
  0x3a   : > { %476 = vmatprep.mubr.bf16.mxu0 %v747_v24  ;;  %517 = vmatprep.mubr.bf16.mxu1 %v747_v24 }
  0x3c   : > { %447 = vmatpush1.bf16.msra.mxu0 %v669_v4  ;;  %488 = vmatpush1.bf16.msra.mxu1 %v671_v5 }
  0x3d   : > { %448 = vmatprep.subr.bf16.mxu0 %v678_v6  ;;  %489 = vmatprep.subr.bf16.mxu1 %v680_v7 }
  0x40   : > { %449 = vmatpush1.bf16.msra.mxu0 %v677_v8  ;;  %490 = vmatpush1.bf16.msra.mxu1 %v679_v9 }
  0x43   : > { %683 = vmatmul.mubr.msk.bf16.vlgmr.msra.gmra.mrb[4].mxu0 %vm358_vm0, %v213_v59  ;;  %684 = vmatmul.mubr.msk.bf16.vlgmr.msra.gmra.mrb[4].mxu1 %vm358_vm0, %v213_v59 }
 0x10a   : > { %v396_v10 = vpop.f32.mrb[0].mxu0  ;;  %v437_v12 = vpop.f32.mrb[0].mxu1 }
 0x10b   : > { %vm526_vm1 = vcmp.ge.f32.partialorder %v396_v10, 0.0  ;;  %v534_v11 = vmul.f32 0.2, %v396_v10  ;;  %v398_v13 = vpop.f32.mrb[1].mxu0  ;;  %vm528_vm2 = vcmp.ge.f32.partialorder %v437_v12, 0.0  ;;  %v439_v17 = vpop.f32.mrb[1].mxu1 }
 0x10c   : > { %v536_v14 = vmul.f32 0.2, %v437_v12  ;;  %vm527_vm3 = vcmp.ge.f32.partialorder %v398_v13, 0.0  ;;  %v535_v15 = vmul.f32 0.2, %v398_v13  ;;  %v400_v18 = vpop.f32.mrb[2].mxu0 }
 0x10d   : > { %v542_v16 = vsel %vm526_vm1, %v396_v10, %v534_v11  ;;  %vm529_vm4 = vcmp.ge.f32.partialorder %v439_v17, 0.0  ;;  %v537_v21 = vmul.f32 0.2, %v439_v17  ;;  %v441_v22 = vpop.f32.mrb[2].mxu1  ;;  %v401_v23 = vpop.f32.mrb[3].mxu0 }
 0x10e   : > { %v544_v19 = vsel %vm528_vm2, %v437_v12, %v536_v14  ;;  %v543_v20 = vsel %vm527_vm3, %v398_v13, %v535_v15  ;;  %v442_v25 = vpop.f32.mrb[3].mxu1 }
 0x10f   : > { %v692_v24 = vpack.c.bf16 %v543_v20, %v542_v16  ;;  %v545_v26 = vsel %vm529_vm4, %v439_v17, %v537_v21 }
 0x110   : > { %v693_v27 = vpack.c.bf16 %v545_v26, %v544_v19 }
 0x111   : > { %582 = vst [vmem:[%s894_s5] sm:$0xff] %v692_v24 }
 0x112   : > { %583 = vst [vmem:[%s894_s5 + $0x8] sm:$0xff] %v693_v27 }
 0x116   : > { %v478_v28 = vpop.f32.mrb[4].mxu0  ;;  %v519_v30 = vpop.f32.mrb[4].mxu1 }
 0x117   : > { %vm530_vm5 = vcmp.ge.f32.partialorder %v478_v28, 0.0  ;;  %v538_v29 = vmul.f32 0.2, %v478_v28  ;;  %v480_v31 = vpop.f32.mrb[5].mxu0  ;;  %vm532_vm6 = vcmp.ge.f32.partialorder %v519_v30, 0.0  ;;  %v521_v35 = vpop.f32.mrb[5].mxu1 }
 0x118   : > { %v540_v32 = vmul.f32 0.2, %v519_v30  ;;  %vm531_vm7 = vcmp.ge.f32.partialorder %v480_v31, 0.0  ;;  %v539_v33 = vmul.f32 0.2, %v480_v31  ;;  %v482_v36 = vpop.f32.mrb[6].mxu0 }
 0x119   : > { %v546_v34 = vsel %vm530_vm5, %v478_v28, %v538_v29  ;;  %vm533_vm8 = vcmp.ge.f32.partialorder %v521_v35, 0.0  ;;  %v541_v39 = vmul.f32 0.2, %v521_v35  ;;  %v523_v40 = vpop.f32.mrb[6].mxu1  ;;  %v483_v41 = vpop.f32.mrb[7].mxu0 }
 0x11a   : > { %v548_v37 = vsel %vm532_vm6, %v519_v30, %v540_v32  ;;  %v547_v38 = vsel %vm531_vm7, %v480_v31, %v539_v33  ;;  %v524_v43 = vpop.f32.mrb[7].mxu1 }
 0x11b   : > { %v694_v42 = vpack.c.bf16 %v547_v38, %v546_v34  ;;  %v549_v44 = vsel %vm533_vm8, %v521_v35, %v541_v39 }
 0x11c   : > { %v695_v45 = vpack.c.bf16 %v549_v44, %v548_v37 }
 0x11d   : > { %584 = vst [vmem:[%s894_s5 + $0x10] sm:$0xff] %v694_v42 }
 0x11e   : > { %585 = vst [vmem:[%s894_s5 + $0x18] sm:$0xff] %v695_v45 }
 0x11f PF: > { %p9_p9 = scmp.ge.s32.totalorder %s780_s13, 4   ;;  %s913_s9 = smov %s741_s10 }
 0x120   : > { %s914_s10 = smov %s789_s16  ;;  %s915_s11 = smov %s780_s13 }
 0x121   :  { %11 = sbr.rel (!%p9_p9) target bundleno = 2 (0x2), region = 86 }

// kernel: discriminator_forward.5
= control target key start
LH: loop header
LB: loop body
LE: loop exit
PB: predicated region body
PF: predicated region fallthrough
CT: control target
= control target key end

     0   :  { %v508_v1 = vmov 0   ;;  %s659_s1 = inlined_call_operand.vmem [shape: bf16[128,512], index: 1, kind: input, shape index: {}]   ;;  %s660_s0 = inlined_call_operand.vmem [shape: bf16[16,128], index: 0, kind: input, shape index: {}]   ;;  %s661_s2 = inlined_call_operand.vmem [shape: bf16[16,512], index: 2, kind: output, shape index: {}]  }
   0x1   :  { %v455_v0 = vld [vmem:[%s659_s1 + $0x4] ss:$16 sps:$4 sm:$0xff]   ;;  %244 = vmatprep.mubr.bf16.mxu0 %v508_v1  ;;  %287 = vmatprep.mubr.bf16.mxu1 %v508_v1  ;;  %v457_v2 = vld [vmem:[%s659_s1 + $0xc] ss:$16 sps:$4 sm:$0xff]   ;;  %v459_v3 = vld [vmem:[%s659_s1] ss:$16 sps:$4 sm:$0xff]  }
   0x2   :  { %212 = vmatprep.subr.bf16.mxu0 %v455_v0  ;;  %v460_v4 = vld [vmem:[%s659_s1 + $0x8] ss:$16 sps:$4 sm:$0xff]   ;;  %255 = vmatprep.subr.bf16.mxu1 %v457_v2  ;;  %v461_v5 = vld [vmem:[%s659_s1 + $0x24] ss:$16 sps:$4 sm:$0xff]   ;;  %v463_v6 = vld [vmem:[%s659_s1 + $0x2c] ss:$16 sps:$4 sm:$0xff]  }
   0x3   :  { %213 = vmatpush1.bf16.msra.mxu0 %v459_v3  ;;  %256 = vmatpush1.bf16.msra.mxu1 %v460_v4  ;;  %v465_v7 = vld [vmem:[%s659_s1 + $0x20] ss:$16 sps:$4 sm:$0xff]   ;;  %v466_v8 = vld [vmem:[%s659_s1 + $0x28] ss:$16 sps:$4 sm:$0xff]   ;;  %v467_v9 = vld [vmem:[%s659_s1 + $0x44] ss:$16 sps:$4 sm:$0xff]  }
   0x4   :  { %214 = vmatprep.subr.bf16.mxu0 %v461_v5  ;;  %257 = vmatprep.subr.bf16.mxu1 %v463_v6  ;;  %v469_v10 = vld [vmem:[%s659_s1 + $0x4c] ss:$16 sps:$4 sm:$0xff]   ;;  %v471_v11 = vld [vmem:[%s659_s1 + $0x40] ss:$16 sps:$4 sm:$0xff]   ;;  %v472_v12 = vld [vmem:[%s659_s1 + $0x48] ss:$16 sps:$4 sm:$0xff]  }
   0x5   :  { %v473_v13 = vld [vmem:[%s659_s1 + $0x64] ss:$16 sps:$4 sm:$0xff]   ;;  %v475_v14 = vld [vmem:[%s659_s1 + $0x6c] ss:$16 sps:$4 sm:$0xff]   ;;  %v477_v15 = vld [vmem:[%s659_s1 + $0x60] ss:$16 sps:$4 sm:$0xff]  }
   0x6   :  { %v478_v16 = vld [vmem:[%s659_s1 + $0x68] ss:$16 sps:$4 sm:$0xff]   ;;  %v479_v17 = vld [vmem:[%s659_s1 + $0x84] ss:$16 sps:$4 sm:$0xff]   ;;  %v481_v18 = vld [vmem:[%s659_s1 + $0x8c] ss:$16 sps:$4 sm:$0xff]  }
   0x7   :  { %215 = vmatpush1.bf16.msra.mxu0 %v465_v7  ;;  %258 = vmatpush1.bf16.msra.mxu1 %v466_v8  ;;  %v483_v19 = vld [vmem:[%s659_s1 + $0x80] ss:$16 sps:$4 sm:$0xff]   ;;  %v484_v20 = vld [vmem:[%s659_s1 + $0x88] ss:$16 sps:$4 sm:$0xff]   ;;  %v485_v21 = vld [vmem:[%s659_s1 + $0xa4] ss:$16 sps:$4 sm:$0xff]  }
   0x8   :  { %216 = vmatprep.subr.bf16.mxu0 %v467_v9  ;;  %259 = vmatprep.subr.bf16.mxu1 %v469_v10  ;;  %v487_v22 = vld [vmem:[%s659_s1 + $0xac] ss:$16 sps:$4 sm:$0xff]   ;;  %v489_v23 = vld [vmem:[%s659_s1 + $0xa0] ss:$16 sps:$4 sm:$0xff]   ;;  %v490_v24 = vld [vmem:[%s659_s1 + $0xa8] ss:$16 sps:$4 sm:$0xff]  }
   0x9   :  { %v491_v25 = vld [vmem:[%s659_s1 + $0xc4] ss:$16 sps:$4 sm:$0xff]   ;;  %v493_v26 = vld [vmem:[%s659_s1 + $0xcc] ss:$16 sps:$4 sm:$0xff]   ;;  %v495_v27 = vld [vmem:[%s659_s1 + $0xc0] ss:$16 sps:$4 sm:$0xff]  }
   0xa   :  { %v496_v28 = vld [vmem:[%s659_s1 + $0xc8] ss:$16 sps:$4 sm:$0xff]   ;;  %v497_v29 = vld [vmem:[%s659_s1 + $0xe4] ss:$16 sps:$4 sm:$0xff]   ;;  %v499_v30 = vld [vmem:[%s659_s1 + $0xec] ss:$16 sps:$4 sm:$0xff]  }
   0xb   :  { %217 = vmatpush1.bf16.msra.mxu0 %v471_v11  ;;  %260 = vmatpush1.bf16.msra.mxu1 %v472_v12  ;;  %v501_v31 = vld [vmem:[%s659_s1 + $0xe0] ss:$16 sps:$4 sm:$0xff]   ;;  %v502_v32 = vld [vmem:[%s659_s1 + $0xe8] ss:$16 sps:$4 sm:$0xff]  }
   0xc   :  { %218 = vmatprep.subr.bf16.mxu0 %v473_v13  ;;  %261 = vmatprep.subr.bf16.mxu1 %v475_v14  ;;  %v503_v33 = vld [vmem:[%s660_s0] sm:$0xff]  }
   0xf   :  { %219 = vmatpush1.bf16.msra.mxu0 %v477_v15  ;;  %262 = vmatpush1.bf16.msra.mxu1 %v478_v16 }
  0x10   :  { %220 = vmatprep.subr.bf16.mxu0 %v479_v17  ;;  %263 = vmatprep.subr.bf16.mxu1 %v481_v18 }
  0x13   :  { %221 = vmatpush1.bf16.msra.mxu0 %v483_v19  ;;  %264 = vmatpush1.bf16.msra.mxu1 %v484_v20 }
  0x14   :  { %222 = vmatprep.subr.bf16.mxu0 %v485_v21  ;;  %265 = vmatprep.subr.bf16.mxu1 %v487_v22 }
  0x17   :  { %223 = vmatpush1.bf16.msra.mxu0 %v489_v23  ;;  %266 = vmatpush1.bf16.msra.mxu1 %v490_v24 }
  0x18   :  { %224 = vmatprep.subr.bf16.mxu0 %v491_v25  ;;  %267 = vmatprep.subr.bf16.mxu1 %v493_v26 }
  0x1b   :  { %225 = vmatpush1.bf16.msra.mxu0 %v495_v27  ;;  %268 = vmatpush1.bf16.msra.mxu1 %v496_v28 }
  0x1c   :  { %226 = vmatprep.subr.bf16.mxu0 %v497_v29  ;;  %269 = vmatprep.subr.bf16.mxu1 %v499_v30 }
  0x1f   :  { %227 = vmatpush1.bf16.msra.mxu0 %v501_v31  ;;  %270 = vmatpush1.bf16.msra.mxu1 %v502_v32 }
  0x22   :  { %245 = vmatmul.mubr.bf16.vlgmr.msra.gmra.mrb[0].mxu0 %v503_v33  ;;  %288 = vmatmul.mubr.bf16.vlgmr.msra.gmra.mrb[0].mxu1 %v503_v33 }
  0xf5   :  { %v246_v34 = vpop.f32.mrb[0].mxu0  ;;  %v289_v35 = vpop.f32.mrb[0].mxu1 }
  0xf6   :  { %v311_v36 = vmul.f32 %v246_v34, %v246_v34  ;;  %v248_v37 = vpop.f32.mrb[1].mxu0  ;;  %v291_v38 = vpop.f32.mrb[1].mxu1  ;;  %v313_v43 = vmul.f32 %v289_v35, %v289_v35 }
  0xf7   :  { %v298_v39 = vadd.f32 %v248_v37, %v246_v34  ;;  %v312_v40 = vmul.f32 %v248_v37, %v248_v37  ;;  %v623_v41 = vpop.f32.mrb[2].mxu0  ;;  %v625_v42 = vpop.f32.mrb[2].mxu1  ;;  %v314_v55 = vmul.f32 %v291_v38, %v291_v38 }
  0xf8   :  { %v315_v44 = vmul.f32 %v623_v41, %v623_v41  ;;  %v629_v45 = vpop.f32.mrb[3].mxu0  ;;  %v631_v46 = vpop.f32.mrb[3].mxu1  ;;  %v317_v51 = vmul.f32 %v625_v42, %v625_v42 }
  0xf9   :  { %v303_v47 = vadd.f32 %v629_v45, %v623_v41  ;;  %v316_v48 = vmul.f32 %v629_v45, %v629_v45  ;;  %v299_v49 = vadd.f32 %v298_v39, %v289_v35  ;;  %v319_v50 = vadd.f32 %v312_v40, %v311_v36 }
  0xfa   :  { %v318_v57 = vmul.f32 %v631_v46, %v631_v46 }
  0xfb   :  { %v324_v52 = vadd.f32 %v316_v48, %v315_v44  ;;  %v300_v53 = vadd.f32 %v299_v49, %v291_v38  ;;  %v304_v54 = vadd.f32 %v303_v47, %v625_v42  ;;  %v320_v56 = vadd.f32 %v319_v50, %v313_v43 }
  0xfd   :  { %301 = vadd.xlane.f32.xlu0 %v300_v53  ;;  %v305_v58 = vadd.f32 %v304_v54, %v631_v46  ;;  %v325_v59 = vadd.f32 %v324_v52, %v317_v51  ;;  %v321_v60 = vadd.f32 %v320_v56, %v314_v55 }
  0xff   :  { %v326_v61 = vadd.f32 %v325_v59, %v318_v57  ;;  %322 = vadd.xlane.f32.xlu1 %v321_v60 }
 0x101   :  { %306 = vadd.xlane.f32.xlu0 %v305_v58 }
 0x103   :  { %327 = vadd.xlane.f32.xlu1 %v326_v61 }
 0x18a   :  { %v302_v62 = vpop.xlane.xlu0 %301 }
 0x18b   :  { %v309_v63 = vmul.f32 0.001953125, %v302_v62 }
 0x18c   :  { %v323_v0 = vpop.xlane.xlu1 %322 }
 0x18d   :  { %v329_v1 = vmul.f32 0.001953125, %v323_v0  ;;  %v331_v2 = vmul.f32 %v309_v63, %v309_v63  ;;  %v341_v14 = vsub.f32 %v246_v34, %v309_v63  ;;  %v342_v15 = vsub.f32 %v248_v37, %v309_v63 }
 0x18e   :  { %v307_v3 = vpop.xlane.xlu0 %306  ;;  %v343_v16 = vsub.f32 %v289_v35, %v309_v63  ;;  %v344_v17 = vsub.f32 %v291_v38, %v309_v63 }
 0x18f   :  { %v310_v4 = vmul.f32 0.001953125, %v307_v3  ;;  %v333_v5 = vsub.f32 %v329_v1, %v331_v2 }
 0x190   :  { %v328_v6 = vpop.xlane.xlu1 %327 }
 0x191   :  { %v335_v7 = vmax.f32 %v333_v5, 0.0  ;;  %v330_v8 = vmul.f32 0.001953125, %v328_v6  ;;  %v332_v9 = vmul.f32 %v310_v4, %v310_v4  ;;  %v345_v23 = vsub.f32 %v623_v41, %v310_v4 }
 0x192   :  { %v346_v24 = vsub.f32 %v629_v45, %v310_v4  ;;  %v347_v25 = vsub.f32 %v625_v42, %v310_v4  ;;  %v348_v30 = vsub.f32 %v631_v46, %v310_v4 }
 0x193   :  { %v337_v10 = vadd.f32 1e-05, %v335_v7  ;;  %v334_v11 = vsub.f32 %v330_v8, %v332_v9 }
 0x195   :  { %504 = vrsqrt.f32 %v337_v10  ;;  %v336_v12 = vmax.f32 %v334_v11, 0.0 }
 0x197   :  { %v338_v13 = vadd.f32 1e-05, %v336_v12 }
 0x199   :  { %506 = vrsqrt.f32 %v338_v13 }
 0x19f   :  { %v505_v18 = vpop.eup %504 }
 0x1a0   :  { %v349_v19 = vmul.f32 %v505_v18, %v341_v14  ;;  %v350_v20 = vmul.f32 %v505_v18, %v342_v15  ;;  %v351_v21 = vmul.f32 %v505_v18, %v343_v16  ;;  %v352_v22 = vmul.f32 %v505_v18, %v344_v17 }
 0x1a2   :  { %vm357_vm0 = vcmp.ge.f32.partialorder %v349_v19, 0.0  ;;  %vm358_vm1 = vcmp.ge.f32.partialorder %v350_v20, 0.0  ;;  %vm359_vm2 = vcmp.ge.f32.partialorder %v351_v21, 0.0  ;;  %vm360_vm3 = vcmp.ge.f32.partialorder %v352_v22, 0.0 }
 0x1a3   :  { %v507_v26 = vpop.eup %506  ;;  %v365_v27 = vmul.f32 0.2, %v349_v19  ;;  %v366_v28 = vmul.f32 0.2, %v350_v20  ;;  %v367_v29 = vmul.f32 0.2, %v351_v21 }
 0x1a4   :  { %v368_v31 = vmul.f32 0.2, %v352_v22  ;;  %v353_v32 = vmul.f32 %v507_v26, %v345_v23  ;;  %v354_v33 = vmul.f32 %v507_v26, %v346_v24  ;;  %v355_v34 = vmul.f32 %v507_v26, %v347_v25 }
 0x1a5   :  { %v373_v35 = vsel %vm357_vm0, %v349_v19, %v365_v27  ;;  %v374_v36 = vsel %vm358_vm1, %v350_v20, %v366_v28  ;;  %v375_v37 = vsel %vm359_vm2, %v351_v21, %v367_v29  ;;  %v356_v38 = vmul.f32 %v507_v26, %v348_v30 }
 0x1a6   :  { %v376_v39 = vsel %vm360_vm3, %v352_v22, %v368_v31  ;;  %v450_v40 = vpack.c.bf16 %v374_v36, %v373_v35  ;;  %vm361_vm4 = vcmp.ge.f32.partialorder %v353_v32, 0.0  ;;  %vm362_vm5 = vcmp.ge.f32.partialorder %v354_v33, 0.0 }
 0x1a7   :  { %v451_v41 = vpack.c.bf16 %v376_v39, %v375_v37  ;;  %vm363_vm6 = vcmp.ge.f32.partialorder %v355_v34, 0.0  ;;  %vm364_vm7 = vcmp.ge.f32.partialorder %v356_v38, 0.0  ;;  %v369_v42 = vmul.f32 0.2, %v353_v32 }
 0x1a8   :  { %405 = vst [vmem:[%s661_s2] sm:$0xff] %v450_v40  ;;  %v370_v43 = vmul.f32 0.2, %v354_v33  ;;  %v371_v44 = vmul.f32 0.2, %v355_v34  ;;  %v372_v45 = vmul.f32 0.2, %v356_v38 }
 0x1a9   :  { %406 = vst [vmem:[%s661_s2 + $0x8] sm:$0xff] %v451_v41  ;;  %v377_v46 = vsel %vm361_vm4, %v353_v32, %v369_v42 }
 0x1aa   :  { %v378_v47 = vsel %vm362_vm5, %v354_v33, %v370_v43  ;;  %v379_v48 = vsel %vm363_vm6, %v355_v34, %v371_v44  ;;  %v380_v49 = vsel %vm364_vm7, %v356_v38, %v372_v45 }
 0x1ab   :  { %v452_v50 = vpack.c.bf16 %v378_v47, %v377_v46  ;;  %v453_v51 = vpack.c.bf16 %v380_v49, %v379_v48 }
 0x1ad   :  { %407 = vst [vmem:[%s661_s2 + $0x10] sm:$0xff] %v452_v50  ;;  %408 = vst [vmem:[%s661_s2 + $0x18] sm:$0xff] %v453_v51 }

// kernel: discriminator_forward.6
= control target key start
LH: loop header
LB: loop body
LE: loop exit
PB: predicated region body
PF: predicated region fallthrough
CT: control target
= control target key end

     0   :  { %s512_s1 = inlined_call_operand.vmem [shape: bf16[256,128], index: 1, kind: input, shape index: {}]   ;;  %s513_s0 = inlined_call_operand.vmem [shape: bf16[32,256], index: 0, kind: input, shape index: {}]   ;;  %s514_s2 = inlined_call_operand.vmem [shape: bf16[32,128], index: 2, kind: output, shape index: {}]  }
   0x1   :  { %v389_v0 = vld [vmem:[%s512_s1 + $0x40] sm:$0xff]   ;;  %v391_v2 = vld [vmem:[%s512_s1 + $0x48] sm:$0xff]   ;;  %v393_v4 = vld [vmem:[%s512_s1 + $0x50] sm:$0xff]  }
   0x2   :  { %v390_v1 = vld [vmem:[%s512_s1] sm:$0xff]   ;;  %345 = vmatprep.subr.bf16.mxu0 %v389_v0  ;;  %373 = vmatprep.subr.bf16.mxu1 %v389_v0  ;;  %v392_v3 = vld [vmem:[%s512_s1 + $0x8] sm:$0xff]   ;;  %v394_v5 = vld [vmem:[%s512_s1 + $0x10] sm:$0xff]  }
   0x3   :  { %346 = vmatpush3.bf16.msra.mxu0 %v390_v1  ;;  %381 = vmatpush3.bf16.msra.mxu1 %v390_v1  ;;  %v395_v6 = vld [vmem:[%s512_s1 + $0x58] sm:$0xff]   ;;  %v397_v8 = vld [vmem:[%s512_s1 + $0x60] sm:$0xff]   ;;  %v399_v10 = vld [vmem:[%s512_s1 + $0x68] sm:$0xff]  }
   0x4   :  { %347 = vmatprep.subr.bf16.mxu0 %v391_v2  ;;  %374 = vmatprep.subr.bf16.mxu1 %v391_v2  ;;  %v396_v7 = vld [vmem:[%s512_s1 + $0x18] sm:$0xff]   ;;  %v398_v9 = vld [vmem:[%s512_s1 + $0x20] sm:$0xff]   ;;  %v400_v13 = vld [vmem:[%s512_s1 + $0x28] sm:$0xff]  }
   0x5   :  { %v407_v11 = vld [vmem:[%s513_s0 + $0x4] ss:$8 sps:$4 sm:$0xff]   ;;  %v410_v12 = vld [vmem:[%s513_s0 + $0x14] ss:$8 sps:$4 sm:$0xff]   ;;  %v405_v18 = vld [vmem:[%s513_s0] ss:$8 sps:$4 sm:$0xff]  }
   0x6   :  { %v401_v14 = vld [vmem:[%s512_s1 + $0x70] sm:$0xff]   ;;  %196 = vmatprep.mubr.bf16.mxu0 %v407_v11  ;;  %204 = vmatprep.mubr.bf16.mxu1 %v410_v12  ;;  %v403_v16 = vld [vmem:[%s512_s1 + $0x78] sm:$0xff]  }
   0x7   :  { %348 = vmatpush3.bf16.msra.mxu0 %v392_v3  ;;  %382 = vmatpush3.bf16.msra.mxu1 %v392_v3  ;;  %v402_v15 = vld [vmem:[%s512_s1 + $0x30] sm:$0xff]   ;;  %v404_v17 = vld [vmem:[%s512_s1 + $0x38] sm:$0xff]  }
   0x8   :  { %349 = vmatprep.subr.bf16.mxu0 %v393_v4  ;;  %375 = vmatprep.subr.bf16.mxu1 %v393_v4  ;;  %v408_v19 = vld [vmem:[%s513_s0 + $0x10] ss:$8 sps:$4 sm:$0xff]  }
   0xb   :  { %350 = vmatpush3.bf16.msra.mxu0 %v394_v5  ;;  %383 = vmatpush3.bf16.msra.mxu1 %v394_v5 }
   0xc   :  { %351 = vmatprep.subr.bf16.mxu0 %v395_v6  ;;  %376 = vmatprep.subr.bf16.mxu1 %v395_v6 }
   0xf   :  { %352 = vmatpush3.bf16.msra.mxu0 %v396_v7  ;;  %384 = vmatpush3.bf16.msra.mxu1 %v396_v7 }
  0x10   :  { %353 = vmatprep.subr.bf16.mxu0 %v397_v8  ;;  %377 = vmatprep.subr.bf16.mxu1 %v397_v8 }
  0x13   :  { %354 = vmatpush3.bf16.msra.mxu0 %v398_v9  ;;  %385 = vmatpush3.bf16.msra.mxu1 %v398_v9 }
  0x14   :  { %355 = vmatprep.subr.bf16.mxu0 %v399_v10  ;;  %378 = vmatprep.subr.bf16.mxu1 %v399_v10 }
  0x17   :  { %356 = vmatpush3.bf16.msra.mxu0 %v400_v13  ;;  %386 = vmatpush3.bf16.msra.mxu1 %v400_v13 }
  0x18   :  { %357 = vmatprep.subr.bf16.mxu0 %v401_v14  ;;  %379 = vmatprep.subr.bf16.mxu1 %v401_v14 }
  0x1b   :  { %358 = vmatpush3.bf16.msra.mxu0 %v402_v15  ;;  %387 = vmatpush3.bf16.msra.mxu1 %v402_v15 }
  0x1c   :  { %359 = vmatprep.subr.bf16.mxu0 %v403_v16  ;;  %380 = vmatprep.subr.bf16.mxu1 %v403_v16 }
  0x1f   :  { %360 = vmatpush3.bf16.msra.mxu0 %v404_v17  ;;  %388 = vmatpush3.bf16.msra.mxu1 %v404_v17 }
  0x22   :  { %197 = vmatmul.mubr.bf16.vlgmr.msra.gmra.mrb[0].mxu0 %v405_v18  ;;  %205 = vmatmul.mubr.bf16.vlgmr.msra.gmra.mrb[0].mxu1 %v408_v19 }
  0xf5   :  { %v361_v20 = vpop.f32.mrb[0].mxu0  ;;  %v367_v21 = vpop.f32.mrb[0].mxu1 }
  0xf6   :  { %v362_v22 = vpop.f32.mrb[1].mxu0  ;;  %v368_v23 = vpop.f32.mrb[1].mxu1 }
  0xf7   :  { %v363_v24 = vadd.f32 %v362_v22, %v361_v20  ;;  %v494_v25 = vadd.f32 %v368_v23, %v367_v21  ;;  %v364_v26 = vpop.f32.mrb[2].mxu0  ;;  %v370_v27 = vpop.f32.mrb[2].mxu1 }
  0xf8   :  { %v365_v28 = vpop.f32.mrb[3].mxu0  ;;  %v371_v29 = vpop.f32.mrb[3].mxu1 }
  0xf9   :  { %v366_v30 = vadd.f32 %v365_v28, %v364_v26  ;;  %v496_v31 = vadd.f32 %v371_v29, %v370_v27  ;;  %217 = vadd.xlane.f32.xlu1 %v494_v25  ;;  %213 = vadd.xlane.f32.xlu0 %v363_v24  ;;  %v226_v33 = vmul.f32 %v363_v24, %v363_v24 }
  0xfa   :  { %v228_v35 = vmul.f32 %v494_v25, %v494_v25 }
  0xfb   :  { %v227_v32 = vmul.f32 %v366_v30, %v366_v30  ;;  %v229_v34 = vmul.f32 %v496_v31, %v496_v31 }
  0xfd   :  { %219 = vadd.xlane.f32.xlu1 %v496_v31  ;;  %215 = vadd.xlane.f32.xlu0 %v366_v30 }
 0x101   :  { %232 = vadd.xlane.f32.xlu1 %v227_v32  ;;  %230 = vadd.xlane.f32.xlu0 %v226_v33 }
 0x105   :  { %236 = vadd.xlane.f32.xlu1 %v229_v34  ;;  %234 = vadd.xlane.f32.xlu0 %v228_v35 }
 0x186   :  { %v218_v36 = vpop.xlane.xlu1 %217  ;;  %v214_v37 = vpop.xlane.xlu0 %213 }
 0x187   :  { %v222_v40 = vmul.f32 0.0078125, %v214_v37  ;;  %v224_v42 = vmul.f32 0.0078125, %v218_v36 }
 0x189   :  { %v242_v46 = vmul.f32 %v222_v40, %v222_v40  ;;  %v244_v52 = vmul.f32 %v224_v42, %v224_v42  ;;  %v262_v6 = vsub.f32 %v363_v24, %v222_v40  ;;  %v264_v13 = vsub.f32 %v494_v25, %v224_v42 }
 0x18a   :  { %v220_v38 = vpop.xlane.xlu1 %219  ;;  %v216_v39 = vpop.xlane.xlu0 %215 }
 0x18b   :  { %v223_v41 = vmul.f32 0.0078125, %v216_v39  ;;  %v225_v43 = vmul.f32 0.0078125, %v220_v38 }
 0x18d   :  { %v243_v47 = vmul.f32 %v223_v41, %v223_v41  ;;  %v245_v53 = vmul.f32 %v225_v43, %v225_v43  ;;  %v263_v4 = vsub.f32 %v366_v30, %v223_v41  ;;  %v265_v10 = vsub.f32 %v496_v31, %v225_v43 }
 0x18e   :  { %v233_v44 = vpop.xlane.xlu1 %232  ;;  %v231_v45 = vpop.xlane.xlu0 %230 }
 0x18f   :  { %v239_v48 = vmul.f32 0.0078125, %v233_v44  ;;  %v238_v49 = vmul.f32 0.0078125, %v231_v45 }
 0x191   :  { %v247_v50 = vsub.f32 %v239_v48, %v243_v47  ;;  %v246_v51 = vsub.f32 %v238_v49, %v242_v46 }
 0x192   :  { %v237_v54 = vpop.xlane.xlu1 %236  ;;  %v235_v55 = vpop.xlane.xlu0 %234 }
 0x193   :  { %v251_v56 = vmax.f32 %v247_v50, 0.0  ;;  %v250_v57 = vmax.f32 %v246_v51, 0.0  ;;  %v241_v58 = vmul.f32 0.0078125, %v237_v54  ;;  %v240_v59 = vmul.f32 0.0078125, %v235_v55 }
 0x195   :  { %v255_v60 = vadd.f32 1e-05, %v251_v56  ;;  %v254_v61 = vadd.f32 1e-05, %v250_v57  ;;  %v249_v62 = vsub.f32 %v241_v58, %v245_v53  ;;  %v248_v63 = vsub.f32 %v240_v59, %v244_v52 }
 0x197   :  { %411 = vrsqrt.f32 %v255_v60  ;;  %v253_v0 = vmax.f32 %v249_v62, 0.0  ;;  %v252_v1 = vmax.f32 %v248_v63, 0.0 }
 0x198   :  { %413 = vrsqrt.f32 %v254_v61 }
 0x199   :  { %v257_v2 = vadd.f32 1e-05, %v253_v0  ;;  %v256_v3 = vadd.f32 1e-05, %v252_v1 }
 0x19b   :  { %415 = vrsqrt.f32 %v257_v2 }
 0x19c   :  { %417 = vrsqrt.f32 %v256_v3 }
 0x1a1   :  { %v412_v5 = vpop.eup %411 }
 0x1a2   :  { %v414_v7 = vpop.eup %413  ;;  %v267_v8 = vmul.f32 %v412_v5, %v263_v4 }
 0x1a3   :  { %v266_v9 = vmul.f32 %v414_v7, %v262_v6 }
 0x1a4   :  { %vm271_vm0 = vcmp.ge.f32.partialorder %v267_v8, 0.0  ;;  %v275_v11 = vmul.f32 0.2, %v267_v8 }
 0x1a5   :  { %v416_v12 = vpop.eup %415  ;;  %vm270_vm1 = vcmp.ge.f32.partialorder %v266_v9, 0.0  ;;  %v274_v14 = vmul.f32 0.2, %v266_v9 }
 0x1a6   :  { %v418_v15 = vpop.eup %417  ;;  %v279_v16 = vsel %vm271_vm0, %v267_v8, %v275_v11  ;;  %v269_v17 = vmul.f32 %v416_v12, %v265_v10 }
 0x1a7   :  { %v278_v18 = vsel %vm270_vm1, %v266_v9, %v274_v14  ;;  %v268_v19 = vmul.f32 %v418_v15, %v264_v13 }
 0x1a8   :  { %v337_v20 = vpack.c.bf16 %v279_v16, %v278_v18  ;;  %vm273_vm2 = vcmp.ge.f32.partialorder %v269_v17, 0.0  ;;  %v277_v21 = vmul.f32 0.2, %v269_v17 }
 0x1a9   :  { %vm272_vm3 = vcmp.ge.f32.partialorder %v268_v19, 0.0  ;;  %v276_v22 = vmul.f32 0.2, %v268_v19 }
 0x1aa   :  { %338 = vst [vmem:[%s514_s2] sm:$0xff] %v337_v20   ;;  %v281_v23 = vsel %vm273_vm2, %v269_v17, %v277_v21 }
 0x1ab   :  { %v280_v24 = vsel %vm272_vm3, %v268_v19, %v276_v22 }
 0x1ac   :  { %v342_v26 = vpack.c.bf16 %v281_v23, %v280_v24 }
 0x1ae   :  { %344 = vst [vmem:[%s514_s2 + $0x8] sm:$0xff] %v342_v26  }

// kernel: discriminator_forward.7
= control target key start
LH: loop header
LB: loop body
LE: loop exit
PB: predicated region body
PF: predicated region fallthrough
CT: control target
= control target key end

     0   :  { %vm500_vm0 = vcmask 261120   ;;  %vm693_vm9 = vcmask 254976   ;;  %vm703_vm10 = vcmask 1024   ;;  %s1215_s1 = inlined_call_operand.vmem [shape: bf16[512,32], index: 1, kind: input, shape index: {}]   ;;  %s1216_s0 = inlined_call_operand.vmem [shape: bf16[64,512], index: 0, kind: input, shape index: {}]   ;;  %s1217_s2 = inlined_call_operand.vmem [shape: f32[64,32], index: 2, kind: input, shape index: {}]   ;;  %s1218_s3 = inlined_call_operand.vmem [shape: f32[2,32], index: 3, kind: input, shape index: {}]   ;;  %s1219_s4 = inlined_call_operand.vmem [shape: f32[2,1], index: 4, kind: output, shape index: {}]  }
   0x1   :  { %v838_v0 = vld [vmem:[%s1215_s1 + $0x40] sm:$0xff]   ;;  %v842_v4 = vld [vmem:[%s1215_s1 + $0x48] sm:$0xff]   ;;  %v846_v8 = vld [vmem:[%s1215_s1 + $0x50] sm:$0xff]  }
   0x2   :  { %v839_v1 = vld [vmem:[%s1215_s1 + $0xc0] sm:$0xff]   ;;  %758 = vmatprep.subr.bf16.mxu0 %v838_v0  ;;  %v843_v5 = vld [vmem:[%s1215_s1 + $0xc8] sm:$0xff]   ;;  %v847_v9 = vld [vmem:[%s1215_s1 + $0xd0] sm:$0xff]  }
   0x3   :  { %v840_v2 = vld [vmem:[%s1215_s1] sm:$0xff]   ;;  %798 = vmatprep.subr.bf16.mxu1 %v839_v1  ;;  %v844_v6 = vld [vmem:[%s1215_s1 + $0x8] sm:$0xff]   ;;  %v848_v10 = vld [vmem:[%s1215_s1 + $0x10] sm:$0xff]  }
   0x4   :  { %v841_v3 = vld [vmem:[%s1215_s1 + $0x80] sm:$0xff]   ;;  %759 = vmatpush3.bf16.msra.mxu0 %v840_v2  ;;  %v845_v7 = vld [vmem:[%s1215_s1 + $0x88] sm:$0xff]   ;;  %v849_v11 = vld [vmem:[%s1215_s1 + $0x90] sm:$0xff]  }
   0x5   :  { %799 = vmatpush3.bf16.msra.mxu1 %v841_v3  ;;  %760 = vmatprep.subr.bf16.mxu0 %v842_v4  ;;  %v850_v12 = vld [vmem:[%s1215_s1 + $0x58] sm:$0xff]   ;;  %v854_v16 = vld [vmem:[%s1215_s1 + $0x60] sm:$0xff]   ;;  %v858_v20 = vld [vmem:[%s1215_s1 + $0x68] sm:$0xff]  }
   0x6   :  { %800 = vmatprep.subr.bf16.mxu1 %v843_v5  ;;  %v851_v13 = vld [vmem:[%s1215_s1 + $0xd8] sm:$0xff]   ;;  %v855_v17 = vld [vmem:[%s1215_s1 + $0xe0] sm:$0xff]   ;;  %v859_v21 = vld [vmem:[%s1215_s1 + $0xe8] sm:$0xff]  }
   0x7   :  { %v852_v14 = vld [vmem:[%s1215_s1 + $0x18] sm:$0xff]   ;;  %v856_v18 = vld [vmem:[%s1215_s1 + $0x20] sm:$0xff]   ;;  %v860_v22 = vld [vmem:[%s1215_s1 + $0x28] sm:$0xff]  }
   0x8   :  { %761 = vmatpush3.bf16.msra.mxu0 %v844_v6  ;;  %v853_v15 = vld [vmem:[%s1215_s1 + $0x98] sm:$0xff]   ;;  %v857_v19 = vld [vmem:[%s1215_s1 + $0xa0] sm:$0xff]   ;;  %v861_v23 = vld [vmem:[%s1215_s1 + $0xa8] sm:$0xff]  }
   0x9   :  { %801 = vmatpush3.bf16.msra.mxu1 %v845_v7  ;;  %762 = vmatprep.subr.bf16.mxu0 %v846_v8  ;;  %v862_v24 = vld [vmem:[%s1215_s1 + $0x70] sm:$0xff]   ;;  %v866_v28 = vld [vmem:[%s1215_s1 + $0x78] sm:$0xff]  }
   0xa   :  { %802 = vmatprep.subr.bf16.mxu1 %v847_v9  ;;  %v863_v25 = vld [vmem:[%s1215_s1 + $0xf0] sm:$0xff]   ;;  %v867_v29 = vld [vmem:[%s1215_s1 + $0xf8] sm:$0xff]  }
   0xb   :  { %v864_v26 = vld [vmem:[%s1215_s1 + $0x30] sm:$0xff]   ;;  %v868_v30 = vld [vmem:[%s1215_s1 + $0x38] sm:$0xff]  }
   0xc   :  { %763 = vmatpush3.bf16.msra.mxu0 %v848_v10  ;;  %v865_v27 = vld [vmem:[%s1215_s1 + $0xb0] sm:$0xff]   ;;  %v869_v31 = vld [vmem:[%s1215_s1 + $0xb8] sm:$0xff]  }
   0xd   :  { %803 = vmatpush3.bf16.msra.mxu1 %v849_v11  ;;  %764 = vmatprep.subr.bf16.mxu0 %v850_v12  ;;  %v870_v32 = vld [vmem:[%s1216_s0] ss:$16 sps:$4 sm:$0xff]   ;;  %v872_v33 = vld [vmem:[%s1216_s0 + $0x4] ss:$16 sps:$4 sm:$0xff]   ;;  %v873_v34 = vld [vmem:[%s1216_s0 + $0x8] ss:$16 sps:$4 sm:$0xff]  }
   0xe   :  { %804 = vmatprep.subr.bf16.mxu1 %v851_v13  ;;  %v875_v35 = vld [vmem:[%s1216_s0 + $0xc] ss:$16 sps:$4 sm:$0xff]   ;;  %402 = vmatprep.mubr.bf16.mxu0 %v872_v33  ;;  %v876_v36 = vld [vmem:[%s1216_s0 + $0x24] ss:$16 sps:$4 sm:$0xff]   ;;  %v880_v38 = vld [vmem:[%s1216_s0 + $0x20] ss:$16 sps:$4 sm:$0xff]  }
   0xf   :  { %467 = vmatprep.mubr.bf16.mxu1 %v875_v35  ;;  %v878_v37 = vld [vmem:[%s1216_s0 + $0x2c] ss:$16 sps:$4 sm:$0xff]   ;;  %v881_v39 = vld [vmem:[%s1216_s0 + $0x28] ss:$16 sps:$4 sm:$0xff]   ;;  %v882_v40 = vld [vmem:[%s1216_s0 + $0x44] ss:$16 sps:$4 sm:$0xff]  }
  0x10   :  { %765 = vmatpush3.bf16.msra.mxu0 %v852_v14  ;;  %v884_v41 = vld [vmem:[%s1216_s0 + $0x4c] ss:$16 sps:$4 sm:$0xff]   ;;  %v886_v42 = vld [vmem:[%s1216_s0 + $0x40] ss:$16 sps:$4 sm:$0xff]   ;;  %v887_v43 = vld [vmem:[%s1216_s0 + $0x48] ss:$16 sps:$4 sm:$0xff]  }
  0x11   :  { %805 = vmatpush3.bf16.msra.mxu1 %v853_v15  ;;  %766 = vmatprep.subr.bf16.mxu0 %v854_v16  ;;  %v888_v44 = vld [vmem:[%s1216_s0 + $0x64] ss:$16 sps:$4 sm:$0xff]   ;;  %v890_v45 = vld [vmem:[%s1216_s0 + $0x6c] ss:$16 sps:$4 sm:$0xff]   ;;  %v892_v46 = vld [vmem:[%s1216_s0 + $0x60] ss:$16 sps:$4 sm:$0xff]  }
  0x12   :  { %806 = vmatprep.subr.bf16.mxu1 %v855_v17  ;;  %v893_v47 = vld [vmem:[%s1216_s0 + $0x68] ss:$16 sps:$4 sm:$0xff]  }
  0x14   :  { %767 = vmatpush3.bf16.msra.mxu0 %v856_v18 }
  0x15   :  { %807 = vmatpush3.bf16.msra.mxu1 %v857_v19  ;;  %768 = vmatprep.subr.bf16.mxu0 %v858_v20 }
  0x16   :  { %808 = vmatprep.subr.bf16.mxu1 %v859_v21 }
  0x18   :  { %769 = vmatpush3.bf16.msra.mxu0 %v860_v22 }
  0x19   :  { %809 = vmatpush3.bf16.msra.mxu1 %v861_v23  ;;  %770 = vmatprep.subr.bf16.mxu0 %v862_v24 }
  0x1a   :  { %810 = vmatprep.subr.bf16.mxu1 %v863_v25 }
  0x1c   :  { %771 = vmatpush3.bf16.msra.mxu0 %v864_v26 }
  0x1d   :  { %811 = vmatpush3.bf16.msra.mxu1 %v865_v27  ;;  %772 = vmatprep.subr.bf16.mxu0 %v866_v28 }
  0x1e   :  { %812 = vmatprep.subr.bf16.mxu1 %v867_v29 }
  0x20   :  { %773 = vmatpush3.bf16.msra.mxu0 %v868_v30 }
  0x21   :  { %813 = vmatpush3.bf16.msra.mxu1 %v869_v31 }
  0x23   :  { %403 = vmatmul.mubr.bf16.vlgmr.msra.gmra.mrb[0].mxu0 %v870_v32 }
  0x24   :  { %468 = vmatmul.mubr.bf16.vlgmr.msra.gmra.mrb[0].mxu1 %v873_v34  ;;  %410 = vmatprep.mubr.bf16.mxu0 %v876_v36 }
  0x25   :  { %475 = vmatprep.mubr.bf16.mxu1 %v878_v37 }
  0x2b   :  { %411 = vmatmul.mubr.bf16.gmra.mrb[4].mxu0 %v880_v38 }
  0x2c   :  { %476 = vmatmul.mubr.bf16.gmra.mrb[4].mxu1 %v881_v39  ;;  %418 = vmatprep.mubr.bf16.mxu0 %v882_v40 }
  0x2d   :  { %483 = vmatprep.mubr.bf16.mxu1 %v884_v41 }
  0x33   :  { %419 = vmatmul.mubr.bf16.gmra.mrb[8].mxu0 %v886_v42 }
  0x34   :  { %484 = vmatmul.mubr.bf16.gmra.mrb[8].mxu1 %v887_v43  ;;  %426 = vmatprep.mubr.bf16.mxu0 %v888_v44 }
  0x35   :  { %491 = vmatprep.mubr.bf16.mxu1 %v890_v45 }
  0x3b   :  { %427 = vmatmul.mubr.bf16.gmra.mrb[12].mxu0 %v892_v46 }
  0x3c   :  { %492 = vmatmul.mubr.bf16.gmra.mrb[12].mxu1 %v893_v47 }
  0xf6   :  { %v774_v48 = vpop.f32.mrb[0].mxu0 }
  0xf7   :  { %v814_v49 = vpop.f32.mrb[0].mxu1  ;;  %v775_v50 = vpop.f32.mrb[1].mxu0 }
  0xf8   :  { %v776_v51 = vadd.f32 %v775_v50, %v774_v48  ;;  %v815_v52 = vpop.f32.mrb[1].mxu1  ;;  %v777_v53 = vpop.f32.mrb[2].mxu0 }
  0xf9   :  { %v816_v54 = vadd.f32 %v815_v52, %v814_v49  ;;  %v817_v55 = vpop.f32.mrb[2].mxu1  ;;  %v778_v56 = vpop.f32.mrb[3].mxu0 }
  0xfa   :  { %v779_v57 = vadd.f32 %v778_v56, %v777_v53  ;;  %v818_v58 = vpop.f32.mrb[3].mxu1 }
  0xfb   :  { %v1083_v59 = vadd.f32 %v816_v54, %v776_v51  ;;  %v819_v60 = vadd.f32 %v818_v58, %v817_v55 }
  0xfd   :  { %v1085_v61 = vadd.f32 %v819_v60, %v779_v57  ;;  %v501_v62 = vsel %vm500_vm0, %v1083_v59, 0.0  ;;  %v534_v63 = vmul.f32 %v1083_v59, %v1083_v59 }
  0xfe   :  { %502 = vadd.xlane.f32.xlu0 %v501_v62  ;;  %v780_v0 = vpop.f32.mrb[4].mxu0 }
  0xff   :  { %v820_v1 = vpop.f32.mrb[4].mxu1  ;;  %v781_v2 = vpop.f32.mrb[5].mxu0  ;;  %v542_v3 = vsel %vm500_vm0, %v534_v63, 0.0  ;;  %v504_v10 = vsel %vm500_vm0, %v1085_v61, 0.0  ;;  %v535_v11 = vmul.f32 %v1085_v61, %v1085_v61 }
 0x100   :  { %v782_v4 = vadd.f32 %v781_v2, %v780_v0  ;;  %v821_v5 = vpop.f32.mrb[5].mxu1  ;;  %543 = vadd.xlane.f32.xlu1 %v542_v3  ;;  %v783_v6 = vpop.f32.mrb[6].mxu0 }
 0x101   :  { %v822_v7 = vadd.f32 %v821_v5, %v820_v1  ;;  %v823_v8 = vpop.f32.mrb[6].mxu1  ;;  %v784_v9 = vpop.f32.mrb[7].mxu0  ;;  %v545_v18 = vsel %vm500_vm0, %v535_v11, 0.0 }
 0x102   :  { %v785_v12 = vadd.f32 %v784_v9, %v783_v6  ;;  %v824_v13 = vpop.f32.mrb[7].mxu1  ;;  %505 = vadd.xlane.f32.xlu0 %v504_v10 }
 0x103   :  { %v1096_v14 = vadd.f32 %v822_v7, %v782_v4  ;;  %v825_v15 = vadd.f32 %v824_v13, %v823_v8 }
 0x105   :  { %v1098_v16 = vadd.f32 %v825_v15, %v785_v12  ;;  %v507_v17 = vsel %vm500_vm0, %v1096_v14, 0.0  ;;  %v536_v19 = vmul.f32 %v1096_v14, %v1096_v14 }
 0x106   :  { %508 = vadd.xlane.f32.xlu1 %v507_v17  ;;  %546 = vadd.xlane.f32.xlu0 %v545_v18  ;;  %v786_v20 = vpop.f32.mrb[8].mxu0 }
 0x107   :  { %v826_v21 = vpop.f32.mrb[8].mxu1  ;;  %v787_v22 = vpop.f32.mrb[9].mxu0  ;;  %v510_v29 = vsel %vm500_vm0, %v1098_v16, 0.0  ;;  %v548_v30 = vsel %vm500_vm0, %v536_v19, 0.0  ;;  %v537_v31 = vmul.f32 %v1098_v16, %v1098_v16 }
 0x108   :  { %v788_v23 = vadd.f32 %v787_v22, %v786_v20  ;;  %v827_v24 = vpop.f32.mrb[9].mxu1  ;;  %v789_v25 = vpop.f32.mrb[10].mxu0 }
 0x109   :  { %v828_v26 = vadd.f32 %v827_v24, %v826_v21  ;;  %v829_v27 = vpop.f32.mrb[10].mxu1  ;;  %v790_v28 = vpop.f32.mrb[11].mxu0  ;;  %v551_v38 = vsel %vm500_vm0, %v537_v31, 0.0 }
 0x10a   :  { %v791_v32 = vadd.f32 %v790_v28, %v789_v25  ;;  %v830_v33 = vpop.f32.mrb[11].mxu1  ;;  %511 = vadd.xlane.f32.xlu1 %v510_v29  ;;  %549 = vadd.xlane.f32.xlu0 %v548_v30 }
 0x10b   :  { %v1110_v34 = vadd.f32 %v828_v26, %v788_v23  ;;  %v831_v35 = vadd.f32 %v830_v33, %v829_v27 }
 0x10d   :  { %v1112_v36 = vadd.f32 %v831_v35, %v791_v32  ;;  %v513_v37 = vsel %vm500_vm0, %v1110_v34, 0.0  ;;  %v538_v39 = vmul.f32 %v1110_v34, %v1110_v34 }
 0x10e   :  { %514 = vadd.xlane.f32.xlu1 %v513_v37  ;;  %552 = vadd.xlane.f32.xlu0 %v551_v38  ;;  %v792_v40 = vpop.f32.mrb[12].mxu0 }
 0x10f   :  { %v832_v41 = vpop.f32.mrb[12].mxu1  ;;  %v793_v42 = vpop.f32.mrb[13].mxu0  ;;  %v516_v49 = vsel %vm500_vm0, %v1112_v36, 0.0  ;;  %v554_v50 = vsel %vm500_vm0, %v538_v39, 0.0  ;;  %v539_v51 = vmul.f32 %v1112_v36, %v1112_v36 }
 0x110   :  { %v794_v43 = vadd.f32 %v793_v42, %v792_v40  ;;  %v833_v44 = vpop.f32.mrb[13].mxu1  ;;  %v795_v45 = vpop.f32.mrb[14].mxu0 }
 0x111   :  { %v834_v46 = vadd.f32 %v833_v44, %v832_v41  ;;  %v835_v47 = vpop.f32.mrb[14].mxu1  ;;  %v796_v48 = vpop.f32.mrb[15].mxu0  ;;  %v557_v58 = vsel %vm500_vm0, %v539_v51, 0.0 }
 0x112   :  { %v797_v52 = vadd.f32 %v796_v48, %v795_v45  ;;  %v836_v53 = vpop.f32.mrb[15].mxu1  ;;  %517 = vadd.xlane.f32.xlu1 %v516_v49  ;;  %555 = vadd.xlane.f32.xlu0 %v554_v50 }
 0x113   :  { %v1124_v54 = vadd.f32 %v834_v46, %v794_v43  ;;  %v837_v55 = vadd.f32 %v836_v53, %v835_v47 }
 0x115   :  { %v1126_v56 = vadd.f32 %v837_v55, %v797_v52  ;;  %v519_v57 = vsel %vm500_vm0, %v1124_v54, 0.0  ;;  %v540_v60 = vmul.f32 %v1124_v54, %v1124_v54 }
 0x116   :  { %520 = vadd.xlane.f32.xlu1 %v519_v57  ;;  %558 = vadd.xlane.f32.xlu0 %v557_v58 }
 0x117   :  { %v522_v62 = vsel %vm500_vm0, %v1126_v56, 0.0  ;;  %v560_v63 = vsel %vm500_vm0, %v540_v60, 0.0  ;;  %v541_v0 = vmul.f32 %v1126_v56, %v1126_v56 }
 0x119   :  { %v563_v1 = vsel %vm500_vm0, %v541_v0, 0.0 }
 0x11a   :  { %523 = vadd.xlane.f32.xlu1 %v522_v62  ;;  %561 = vadd.xlane.f32.xlu0 %v560_v63 }
 0x11e   :  { %564 = vadd.xlane.f32.xlu1 %v563_v1 }
 0x18b   :  { %v503_v2 = vpop.xlane.xlu0 %502 }
 0x18c   :  { %v1139_v3 = vmul.f32 0.03125, %v503_v2 }
 0x18d   :  { %v544_v4 = vpop.xlane.xlu1 %543 }
 0x18e   :  { %v574_v5 = vmul.f32 %v1139_v3, %v1139_v3  ;;  %v566_v6 = vmul.f32 0.03125, %v544_v4  ;;  %v598_v57 = vsub.f32 %v1083_v59, %v1139_v3 }
 0x18f   :  { %v506_v7 = vpop.xlane.xlu0 %505 }
 0x190   :  { %v527_v8 = vmul.f32 0.03125, %v506_v7  ;;  %v582_v9 = vsub.f32 %v566_v6, %v574_v5 }
 0x192   :  { %v575_v12 = vmul.f32 %v527_v8, %v527_v8  ;;  %v590_v17 = vmax.f32 %v582_v9, 0.0  ;;  %v599_v58 = vsub.f32 %v1085_v61, %v527_v8 }
 0x193   :  { %v509_v10 = vpop.xlane.xlu1 %508  ;;  %v547_v11 = vpop.xlane.xlu0 %546 }
 0x194   :  { %v528_v13 = vmul.f32 0.03125, %v509_v10  ;;  %v567_v15 = vmul.f32 0.03125, %v547_v11  ;;  %v606_v25 = vadd.f32 1e-05, %v590_v17 }
 0x196   :  { %v583_v18 = vsub.f32 %v567_v15, %v575_v12  ;;  %v576_v21 = vmul.f32 %v528_v13, %v528_v13  ;;  %v600_v4 = vsub.f32 %v1096_v14, %v528_v13 }
 0x197   :  { %v512_v19 = vpop.xlane.xlu1 %511  ;;  %v550_v20 = vpop.xlane.xlu0 %549 }
 0x198   :  { %v591_v22 = vmax.f32 %v583_v18, 0.0  ;;  %v1143_v23 = vmul.f32 0.03125, %v512_v19  ;;  %v568_v24 = vmul.f32 0.03125, %v550_v20 }
 0x19a   :  { %v607_v26 = vadd.f32 1e-05, %v591_v22  ;;  %v584_v27 = vsub.f32 %v568_v24, %v576_v21  ;;  %v577_v28 = vmul.f32 %v1143_v23, %v1143_v23  ;;  %v601_v17 = vsub.f32 %v1098_v16, %v1143_v23  ;;  %v655_v24 = vld [vmem:[%s1217_s2 + $0x8] sm:$0xff] }
 0x19b   :  { %v515_v29 = vpop.xlane.xlu1 %514  ;;  %v553_v30 = vpop.xlane.xlu0 %552 }
 0x19c   :  { %894 = vrsqrt.f32 %v607_v26  ;;  %v592_v31 = vmax.f32 %v584_v27, 0.0  ;;  %v1147_v32 = vmul.f32 0.03125, %v515_v29  ;;  %v569_v33 = vmul.f32 0.03125, %v553_v30  ;;  %v654_v27 = vld [vmem:[%s1217_s2] sm:$0xff]  ;;  %v656_v30 = vld [vmem:[%s1217_s2 + $0x10] sm:$0xff] }
 0x19d   :  { %896 = vrsqrt.f32 %v606_v25 }
 0x19e   :  { %v608_v35 = vadd.f32 1e-05, %v592_v31  ;;  %v585_v37 = vsub.f32 %v569_v33, %v577_v28  ;;  %v578_v40 = vmul.f32 %v1147_v32, %v1147_v32  ;;  %v602_v16 = vsub.f32 %v1110_v34, %v1147_v32  ;;  %v657_v34 = vld [vmem:[%s1217_s2 + $0x18] sm:$0xff] }
 0x19f   :  { %v518_v38 = vpop.xlane.xlu1 %517  ;;  %v556_v39 = vpop.xlane.xlu0 %555 }
 0x1a0   :  { %898 = vrsqrt.f32 %v608_v35  ;;  %v593_v41 = vmax.f32 %v585_v37, 0.0  ;;  %v570_v42 = vmul.f32 0.03125, %v556_v39  ;;  %v1151_v43 = vmul.f32 0.03125, %v518_v38 }
 0x1a2   :  { %v609_v44 = vadd.f32 1e-05, %v593_v41  ;;  %v586_v45 = vsub.f32 %v570_v42, %v578_v40  ;;  %v579_v51 = vmul.f32 %v1151_v43, %v1151_v43  ;;  %v603_v40 = vsub.f32 %v1112_v36, %v1151_v43  ;;  %v659_v36 = vld [vmem:[%s1217_s2 + $0x28] sm:$0xff] }
 0x1a3   :  { %v521_v46 = vpop.xlane.xlu1 %520  ;;  %v559_v47 = vpop.xlane.xlu0 %558 }
 0x1a4   :  { %900 = vrsqrt.f32 %v609_v44  ;;  %v594_v48 = vmax.f32 %v586_v45, 0.0  ;;  %v1153_v49 = vmul.f32 0.03125, %v521_v46  ;;  %v571_v50 = vmul.f32 0.03125, %v559_v47  ;;  %v658_v44 = vld [vmem:[%s1217_s2 + $0x20] sm:$0xff] }
 0x1a6   :  { %v895_v52 = vpop.eup %894  ;;  %v610_v53 = vadd.f32 1e-05, %v594_v48  ;;  %v587_v60 = vsub.f32 %v571_v50, %v579_v51  ;;  %v580_v0 = vmul.f32 %v1153_v49, %v1153_v49  ;;  %v604_v50 = vsub.f32 %v1124_v54, %v1153_v49  ;;  %v660_v54 = vld [vmem:[%s1217_s2 + $0x30] sm:$0xff] }
 0x1a7   :  { %v897_v55 = vpop.eup %896  ;;  %v524_v62 = vpop.xlane.xlu1 %523  ;;  %v623_v5 = vmul.f32 %v895_v52, %v599_v58 }
 0x1a8   :  { %v562_v63 = vpop.xlane.xlu0 %561  ;;  %902 = vrsqrt.f32 %v610_v53  ;;  %v1162_v1 = vmul.f32 0.03125, %v524_v62  ;;  %v595_v6 = vmax.f32 %v587_v60, 0.0  ;;  %v622_v9 = vmul.f32 %v897_v55, %v598_v57 }
 0x1a9   :  { %v572_v2 = vmul.f32 0.03125, %v562_v63  ;;  %v639_v15 = vmul.f32 0.2, %v623_v5  ;;  %vm631_vm1 = vcmp.ge.f32.partialorder %v623_v5, 0.0 }
 0x1aa   :  { %v899_v7 = vpop.eup %898  ;;  %v611_v3 = vadd.f32 1e-05, %v595_v6  ;;  %v581_v8 = vmul.f32 %v1162_v1, %v1162_v1  ;;  %v638_v14 = vmul.f32 0.2, %v622_v9  ;;  %vm630_vm2 = vcmp.ge.f32.partialorder %v622_v9, 0.0 }
 0x1ab   :  { %v588_v10 = vsub.f32 %v572_v2, %v580_v0  ;;  %v624_v59 = vmul.f32 %v899_v7, %v600_v4  ;;  %v565_v61 = vpop.xlane.xlu1 %564  ;;  %v647_v25 = vsel %vm631_vm1, %v623_v5, %v639_v15  ;;  %v605_v58 = vsub.f32 %v1126_v56, %v1162_v1 }
 0x1ac   :  { %v573_v12 = vmul.f32 0.03125, %v565_v61  ;;  %904 = vrsqrt.f32 %v611_v3  ;;  %v646_v28 = vsel %vm630_vm2, %v622_v9, %v638_v14  ;;  %v663_v35 = vmul.f32 %v655_v24, %v647_v25 }
 0x1ad   :  { %v596_v11 = vmax.f32 %v588_v10, 0.0  ;;  %v640_v20 = vmul.f32 0.2, %v624_v59  ;;  %vm632_vm3 = vcmp.ge.f32.partialorder %v624_v59, 0.0  ;;  %v662_v37 = vmul.f32 %v654_v27, %v646_v28  ;;  %v661_v10 = vld [vmem:[%s1217_s2 + $0x38] sm:$0xff] }
 0x1ae   :  { %v901_v18 = vpop.eup %900  ;;  %v589_v19 = vsub.f32 %v573_v12, %v581_v8  ;;  %v671_v45 = vsel %vm500_vm0, %v663_v35, 0.0 }
 0x1af   :  { %v612_v13 = vadd.f32 1e-05, %v596_v11  ;;  %v625_v21 = vmul.f32 %v901_v18, %v601_v17  ;;  %v648_v31 = vsel %vm632_vm3, %v624_v59, %v640_v20  ;;  %v670_v48 = vsel %vm500_vm0, %v662_v37, 0.0 }
 0x1b0   :  { %v597_v22 = vmax.f32 %v589_v19, 0.0  ;;  %v664_v39 = vmul.f32 %v656_v30, %v648_v31  ;;  %v672_v57 = vadd.f32 %v671_v45, %v670_v48 }
 0x1b1   :  { %906 = vrsqrt.f32 %v612_v13  ;;  %v641_v23 = vmul.f32 0.2, %v625_v21  ;;  %vm633_vm4 = vcmp.ge.f32.partialorder %v625_v21, 0.0 }
 0x1b2   :  { %v903_v26 = vpop.eup %902  ;;  %v613_v29 = vadd.f32 1e-05, %v597_v22  ;;  %v673_v53 = vsel %vm500_vm0, %v664_v39, 0.0 }
 0x1b3   :  { %v626_v33 = vmul.f32 %v903_v26, %v602_v16  ;;  %v649_v32 = vsel %vm633_vm4, %v625_v21, %v641_v23  ;;  %v674_v0 = vadd.f32 %v673_v53, %v672_v57  ;;  %v691_v21 = vld [vmem:[%s1218_s3] sm:$0x3] }
 0x1b4   :  { %908 = vrsqrt.f32 %v613_v29  ;;  %v665_v46 = vmul.f32 %v657_v34, %v649_v32 }
 0x1b5   :  { %vm634_vm5 = vcmp.ge.f32.partialorder %v626_v33, 0.0  ;;  %v642_v38 = vmul.f32 0.2, %v626_v33 }
 0x1b6   :  { %v905_v41 = vpop.eup %904  ;;  %v675_v62 = vsel %vm500_vm0, %v665_v46, 0.0 }
 0x1b7   :  { %v650_v42 = vsel %vm634_vm5, %v626_v33, %v642_v38  ;;  %v627_v47 = vmul.f32 %v905_v41, %v603_v40  ;;  %v676_v7 = vadd.f32 %v675_v62, %v674_v0 }
 0x1b8   :  { %v666_v43 = vmul.f32 %v658_v44, %v650_v42 }
 0x1b9   :  { %vm635_vm6 = vcmp.ge.f32.partialorder %v627_v47, 0.0  ;;  %v643_v52 = vmul.f32 0.2, %v627_v47 }
 0x1ba   :  { %v677_v4 = vsel %vm500_vm0, %v666_v43, 0.0 }
 0x1bb   :  { %v907_v51 = vpop.eup %906  ;;  %v651_v60 = vsel %vm635_vm6, %v627_v47, %v643_v52  ;;  %v678_v59 = vadd.f32 %v677_v4, %v676_v7 }
 0x1bc   :  { %v628_v55 = vmul.f32 %v907_v51, %v604_v50  ;;  %v667_v49 = vmul.f32 %v659_v36, %v651_v60 }
 0x1be   :  { %v644_v63 = vmul.f32 0.2, %v628_v55  ;;  %vm636_vm7 = vcmp.ge.f32.partialorder %v628_v55, 0.0  ;;  %v909_v2 = vpop.eup %908  ;;  %v679_v56 = vsel %vm500_vm0, %v667_v49, 0.0 }
 0x1bf   :  { %v629_v5 = vmul.f32 %v909_v2, %v605_v58  ;;  %v680_v8 = vadd.f32 %v679_v56, %v678_v59 }
 0x1c0   :  { %v652_v6 = vsel %vm636_vm7, %v628_v55, %v644_v63 }
 0x1c1   :  { %v668_v9 = vmul.f32 %v660_v54, %v652_v6  ;;  %v645_v1 = vmul.f32 0.2, %v629_v5  ;;  %vm637_vm8 = vcmp.ge.f32.partialorder %v629_v5, 0.0 }
 0x1c3   :  { %v681_v3 = vsel %vm500_vm0, %v668_v9, 0.0  ;;  %v653_v61 = vsel %vm637_vm8, %v629_v5, %v645_v1 }
 0x1c4   :  { %v669_v11 = vmul.f32 %v661_v10, %v653_v61  ;;  %v682_v12 = vadd.f32 %v681_v3, %v680_v8 }
 0x1c6   :  { %v683_v15 = vsel %vm500_vm0, %v669_v11, 0.0 }
 0x1c7   :  { %v684_v17 = vadd.f32 %v683_v15, %v682_v12 }
 0x1c9   :  { %v685_v18 = vrot.slane %v684_v17, 4 }
 0x1cb   :  { %v686_v14 = vadd.f32 %v685_v18, %v684_v17 }
 0x1cd   :  { %v687_v13 = vrot.slane %v686_v14, 2 }
 0x1cf   :  { %v688_v19 = vadd.f32 %v687_v13, %v686_v14 }
 0x1d1   :  { %v689_v20 = vrot.slane %v688_v19, 1 }
 0x1d3   :  { %v690_v22 = vadd.f32 %v689_v20, %v688_v19 }
 0x1d5   :  { %v692_v24 = vmul.f32 %v691_v21, %v690_v22 }
 0x1d7   :  { %v694_v25 = vsel %vm693_vm9, %v692_v24, 0.0 }
 0x1d8   :  { %695 = vadd.xlane.f32.xlu0 %v694_v25 }
 0x265   :  { %v696_v16 = vpop.xlane.xlu0 %695 }
 0x266   :  { %v757_v23 = vmul.f32 -1.442695, %v696_v16 }
 0x268   :  { %910 = vpow2.f32 %v757_v23 }
 0x272   :  { %v911_v26 = vpop.eup %910 }
 0x273   :  { %v700_v27 = vadd.f32 1.0, %v911_v26 }
 0x275   :  { %912 = vrcp.f32 %v700_v27 }
 0x27f   :  { %v913_v28 = vpop.eup %912 }
 0x280   :  { %704 = vst.msk [vmem:[%s1219_s4] sm:$0x3] %vm703_vm10, %v913_v28 }

</bundles_post_ra>
